<compile_context>
chip_gen: v7x
topology: tpu7x:2x2x1
jax: 0.10.0
libtpu: 0.0.40
codegen_flags: <defaults>
</compile_context>

<pallas_src>
import jax
import jax.numpy as jnp
from jax.experimental import pallas as pl
from jax.experimental.pallas import tpu as pltpu

BERT_DIM = 768
PROJ_DIM = 200
FC1_DIM = 128
FC2_DIM = 64

# tanh-approx GELU runs its transcendental on the EUP slot (free where the
# VALU is the binding slot, i.e. v5e / v7x); exact erf is a VALU polynomial.
# The ~1e-3 difference vs. nn.GELU()'s erf form is well inside the bf16
# tolerance used below.  Set False for bit-closer parity with PyTorch.
GELU_TANH_APPROX = True


def _gelu_exact(x):
    return 0.5 * x * (1.0 + jax.lax.erf(x * 0.7071067811865476))


def _gelu(x):
    if GELU_TANH_APPROX:
        return jax.nn.gelu(x, approximate=True)
    return _gelu_exact(x)


def _layer_norm(x, gamma, beta, eps=1e-5):
    # One-pass variance (stats already f32): saves a full (x - mu)**2 pass.
    mu = jnp.mean(x, axis=-1, keepdims=True)
    var = jnp.maximum(jnp.mean(x * x, axis=-1, keepdims=True) - mu * mu, 0.0)
    return (x - mu) * jax.lax.rsqrt(var + eps) * gamma + beta


def similarity_head_kernel(
    cls_ref, s1_ref, s2_ref,
    wdense_ref, bdense_ref, g_bert_ref, b_bert_ref,
    wext_ref, bext_ref, g_ext_ref, b_ext_ref,
    w1a_ref, w1b_ref, w1c_ref, b1_ref,
    w2_ref, b2_ref, w3_ref, b3_ref,
    out_ref,
):
    wdt = wdense_ref.dtype          # MXU feed dtype (bf16 by default)
    tb = cls_ref.shape[0]

    # --- BERT branch: dense(768->200) -> GELU -> LayerNorm (f32 stats).
    #     Inputs arrive f32 (no wrapper cast pass over HBM); cast in-VMEM. ---
    e = jnp.dot(cls_ref[...].astype(wdt), wdense_ref[...],
                preferred_element_type=jnp.float32)
    e = _layer_norm(_gelu(e + bdense_ref[...]), g_bert_ref[...], b_bert_ref[...])

    # --- external branch (weights shared between sentence1 / sentence2):
    #     stack along the sublane axis -> one RHS push, one matmul,
    #     one GELU/LayerNorm pass -- then split. ---
    s12 = jnp.concatenate([s1_ref[...], s2_ref[...]], axis=0).astype(wdt)
    y = jnp.dot(s12, wext_ref[...], preferred_element_type=jnp.float32)
    y = _layer_norm(_gelu(y + bext_ref[...]), g_ext_ref[...], b_ext_ref[...])
    s1 = y[:tb]
    s2 = y[tb:]

    # --- concat(600) + fc1 as a split matmul with pre-split weights:
    #     [e | s1 | s2] @ W1 == e @ W1a + s1 @ W1b + s2 @ W1c.
    #     Dropout is inference-mode (identity). ---
    h = (jnp.dot(e.astype(wdt), w1a_ref[...], preferred_element_type=jnp.float32)
         + jnp.dot(s1.astype(wdt), w1b_ref[...], preferred_element_type=jnp.float32)
         + jnp.dot(s2.astype(wdt), w1c_ref[...], preferred_element_type=jnp.float32)
         + b1_ref[...])
    h = jnp.maximum(h, 0.0)                                     # relu(fc1)

    h = jnp.dot(h.astype(wdt), w2_ref[...], preferred_element_type=jnp.float32)
    h = jnp.maximum(h + b2_ref[...], 0.0)                       # relu(fc2)

    # fc3 has a single output column: VPU multiply + lane reduce instead of a
    # 1-column MXU matmul.
    logit = jnp.sum(h * w3_ref[...], axis=-1, keepdims=True) + b3_ref[...]
    out_ref[...] = jax.nn.sigmoid(logit)                        # Sigmoid


def _round_up(x, m):
    return (x + m - 1) // m * m


def _choose_batch_tile(B, *, max_tile=1024, target_steps=4, align=16):
    """Sublane-aligned batch tile giving ~target_steps grid steps so DMA /
    compute double-buffering and the v7x dual-TensorCore split stay active,
    while keeping the pad ratio small for awkward B."""
    tB = _round_up(max(1, -(-B // target_steps)), align)
    tB = max(align, min(tB, max_tile, _round_up(B, align)))
    return tB


def _vmem_limit_bytes(tB, E, weight_bytes):
    """Explicit VMEM budget: double-buffered f32 input/output tiles +
    double-buffered resident weights + f32 intermediates, with headroom.
    Clamped to 48 MiB so we stay under v7x's 64 MiB physical VMEM per TC."""
    lane = lambda d: _round_up(d, 128)
    io = 2 * tB * (lane(BERT_DIM) + 2 * lane(E) + 128) * 4
    inter = tB * (6 * lane(PROJ_DIM) + 2 * lane(E)
                  + lane(FC1_DIM) + lane(FC2_DIM)) * 4
    est = io + 2 * weight_bytes + inter
    return int(min(max(2 * est, 32 * 1024 * 1024), 48 * 1024 * 1024))


def similarity_forward(cls_emb, s1, s2, params, *, use_bf16=True, max_tile=1024):
    """cls_emb: (B, 768) f32, s1/s2: (B, T, E), params from init_params."""
    (wdense, bdense, g_bert, b_bert,
     wext, bext, g_ext, b_ext,
     w1, b1, w2, b2, w3, b3) = params

    # .float() + mean over the sentence axis in plain XLA: matches
    # torch.mean(x.float(), dim=1) and cuts kernel DMA bytes for s1/s2 by T x.
    s1p = jnp.mean(s1.astype(jnp.float32), axis=1)
    s2p = jnp.mean(s2.astype(jnp.float32), axis=1)
    cls_in = cls_emb.astype(jnp.float32)

    # Matmul weights in bf16; f32 activations are cast in-kernel (no separate
    # XLA cast pass over HBM).  All dots accumulate in f32.
    wdt = jnp.bfloat16 if use_bf16 else jnp.float32

    # fc1 pre-split into three aligned 200-row blocks; fc3 as a broadcast row.
    w1a = w1[:PROJ_DIM]
    w1b = w1[PROJ_DIM:2 * PROJ_DIM]
    w1c = w1[2 * PROJ_DIM:]
    w3_row = w3.reshape(1, FC2_DIM)

    weights = (
        wdense.astype(wdt), bdense, g_bert, b_bert,
        wext.astype(wdt), bext, g_ext, b_ext,
        w1a.astype(wdt), w1b.astype(wdt), w1c.astype(wdt), b1,
        w2.astype(wdt), b2, w3_row, b3,
    )

    B = cls_in.shape[0]
    E = s1p.shape[1]

    tB = _choose_batch_tile(B, max_tile=max_tile)
    B_pad = _round_up(B, tB)
    pad = B_pad - B
    if pad:
        # Padded zero rows are numerically safe (var=0 -> rsqrt(eps) path)
        # and are sliced off below.
        cls_in = jnp.pad(cls_in, ((0, pad), (0, 0)))
        s1p = jnp.pad(s1p, ((0, pad), (0, 0)))
        s2p = jnp.pad(s2p, ((0, pad), (0, 0)))

    grid = (B_pad // tB,)

    def row_spec(d):
        return pl.BlockSpec((tB, d), lambda i: (i, 0))

    def resident_spec(a):
        # Same block index every grid step -> weight stays VMEM-resident.
        return pl.BlockSpec(a.shape, lambda i: (0, 0))

    weight_bytes = sum(int(x.size) * x.dtype.itemsize for x in weights)

    out = pl.pallas_call(
        similarity_head_kernel,
        out_shape=jax.ShapeDtypeStruct((B_pad, 1), jnp.float32),
        grid=grid,
        in_specs=[row_spec(BERT_DIM), row_spec(E), row_spec(E)]
                 + [resident_spec(w) for w in weights],
        # (tB, 1) store is lane-sparse but output bytes are negligible
        # (4*tB per grid step vs ~3-4 KB/row of input traffic).
        out_specs=pl.BlockSpec((tB, 1), lambda i: (i, 0)),
        compiler_params=pltpu.CompilerParams(
            dimension_semantics=("parallel",),     # megacore batch split
            vmem_limit_bytes=_vmem_limit_bytes(tB, E, weight_bytes),
        ),
    )(cls_in, s1p, s2p, *weights)
    return out[:B]


def similarity_reference(cls_emb, s1, s2, params):
    """Pure-JAX f32 reference with exact-erf GELU (PyTorch nn.GELU default)."""
    (wdense, bdense, g_bert, b_bert,
     wext, bext, g_ext, b_ext,
     w1, b1, w2, b2, w3, b3) = params

    def ln(x, g, b, eps=1e-5):
        mu = jnp.mean(x, axis=-1, keepdims=True)
        var = jnp.mean((x - mu) ** 2, axis=-1, keepdims=True)
        return (x - mu) * jax.lax.rsqrt(var + eps) * g + b

    e = ln(_gelu_exact(cls_emb @ wdense + bdense), g_bert, b_bert)

    def ext(x):
        m = jnp.mean(x.astype(jnp.float32), axis=1)
        return ln(_gelu_exact(m @ wext + bext), g_ext, b_ext)

    c = jnp.concatenate([e, ext(s1), ext(s2)], axis=-1)
    h = jnp.maximum(c @ w1 + b1, 0.0)
    h = jnp.maximum(h @ w2 + b2, 0.0)
    return jax.nn.sigmoid(h @ w3 + b3)


def init_params(key, external_embed_dim):
    """Deterministic synthetic parameters matching the nn.Module shapes.
    Linear weights stored as (in, out) so the kernel computes x @ W + b."""
    ks = jax.random.split(key, 6)

    def dense(k, fan_in, fan_out):
        w = jax.random.normal(k, (fan_in, fan_out), jnp.float32) * 0.02
        b = jnp.zeros((1, fan_out), jnp.float32)
        return w, b

    wdense, bdense = dense(ks[0], BERT_DIM, PROJ_DIM)          # dense_layer
    g_bert = jnp.ones((1, PROJ_DIM), jnp.float32)              # layer_norm_bert
    b_bert = jnp.zeros((1, PROJ_DIM), jnp.float32)
    wext, bext = dense(ks[1], external_embed_dim, PROJ_DIM)    # external_dense
    g_ext = jnp.ones((1, PROJ_DIM), jnp.float32)               # layer_norm_external
    b_ext = jnp.zeros((1, PROJ_DIM), jnp.float32)
    w1, b1 = dense(ks[2], 3 * PROJ_DIM, FC1_DIM)               # fc1
    w2, b2 = dense(ks[3], FC1_DIM, FC2_DIM)                    # fc2
    w3, b3 = dense(ks[4], FC2_DIM, 1)                          # fc3

    return (wdense, bdense, g_bert, b_bert,
            wext, bext, g_ext, b_ext,
            w1, b1, w2, b2, w3, b3)


if __name__ == "__main__":
    B, S, T, E = 2, 8, 4, 32        # batch, bert seq len, ext seq len, external_embed_dim
    VOCAB = 50

    key = jax.random.PRNGKey(0)
    k_ids, k_emb, k_s1, k_s2, k_p = jax.random.split(key, 5)

    input_ids = jax.random.randint(k_ids, (B, S), 0, VOCAB, dtype=jnp.int32)
    attention_mask = jnp.ones((B, S), jnp.int32)
    sentence1_embeddings = jax.random.normal(k_s1, (B, T, E), jnp.float32)
    sentence2_embeddings = jax.random.normal(k_s2, (B, T, E), jnp.float32)

    # TODO(synk): full BERT encoder not implemented; deterministic embedding
    # lookup stand-in produces last_hidden_state[:, 0, :] (CLS embedding).
    emb_table = jax.random.normal(k_emb, (VOCAB, BERT_DIM), jnp.float32) * 0.02
    cls_embeddings = emb_table[input_ids[:, 0]]        # (B, 768)
    del attention_mask  # consumed only by the (stubbed) BERT encoder

    params = init_params(k_p, E)

    probs = similarity_forward(cls_embeddings, sentence1_embeddings,
                               sentence2_embeddings, params)
    probs = jax.block_until_ready(probs)

    ref = similarity_reference(cls_embeddings, sentence1_embeddings,
                               sentence2_embeddings, params)

    assert probs.shape == (B, 1)
    assert bool(jnp.all((probs >= 0.0) & (probs <= 1.0)))
    # bf16 weights / in-kernel bf16 casts with f32 accumulation plus tanh-GELU:
    # allow a small tolerance vs. the exact f32 reference.
    max_err = float(jnp.max(jnp.abs(probs - ref)))
    assert max_err < 3e-2, f"max abs diff vs f32 reference: {max_err}"
    print("KERNEL_OK")
</pallas_src>

<mosaic_0001>
module attributes {stable_mosaic.version = 11 : i64} {
  func.func @similarity_head_kernel(%arg0: i32, %arg1: memref<16x768xf32, #tpu.memory_space<vmem>>, %arg2: memref<16x32xf32, #tpu.memory_space<vmem>>, %arg3: memref<16x32xf32, #tpu.memory_space<vmem>>, %arg4: memref<768x200xbf16, #tpu.memory_space<vmem>>, %arg5: memref<1x200xf32, #tpu.memory_space<vmem>>, %arg6: memref<1x200xf32, #tpu.memory_space<vmem>>, %arg7: memref<1x200xf32, #tpu.memory_space<vmem>>, %arg8: memref<32x200xbf16, #tpu.memory_space<vmem>>, %arg9: memref<1x200xf32, #tpu.memory_space<vmem>>, %arg10: memref<1x200xf32, #tpu.memory_space<vmem>>, %arg11: memref<1x200xf32, #tpu.memory_space<vmem>>, %arg12: memref<200x128xbf16, #tpu.memory_space<vmem>>, %arg13: memref<200x128xbf16, #tpu.memory_space<vmem>>, %arg14: memref<200x128xbf16, #tpu.memory_space<vmem>>, %arg15: memref<1x128xf32, #tpu.memory_space<vmem>>, %arg16: memref<128x64xbf16, #tpu.memory_space<vmem>>, %arg17: memref<1x64xf32, #tpu.memory_space<vmem>>, %arg18: memref<1x64xf32, #tpu.memory_space<vmem>>, %arg19: memref<1x1xf32, #tpu.memory_space<vmem>>, %arg20: memref<16x1xf32, #tpu.memory_space<vmem>>) attributes {dimension_semantics = [#tpu.dimension_semantics<parallel>], iteration_bounds = array<i64: 1>, scalar_prefetch = 0 : i64, scratch_operands = 0 : i64, tpu.core_type = #tpu.core_type<tc>, window_params = [{transform_indices = @transform_0, window_bounds = array<i64: 16, 768>}, {transform_indices = @transform_1, window_bounds = array<i64: 16, 32>}, {transform_indices = @transform_2, window_bounds = array<i64: 16, 32>}, {pipeline_mode = #tpu.pipeline_mode<synchronous>, transform_indices = @transform_3, window_bounds = array<i64: 768, 200>}, {pipeline_mode = #tpu.pipeline_mode<synchronous>, transform_indices = @transform_4, window_bounds = array<i64: 1, 200>}, {pipeline_mode = #tpu.pipeline_mode<synchronous>, transform_indices = @transform_5, window_bounds = array<i64: 1, 200>}, {pipeline_mode = #tpu.pipeline_mode<synchronous>, transform_indices = @transform_6, window_bounds = array<i64: 1, 200>}, {pipeline_mode = #tpu.pipeline_mode<synchronous>, transform_indices = @transform_7, window_bounds = array<i64: 32, 200>}, {pipeline_mode = #tpu.pipeline_mode<synchronous>, transform_indices = @transform_8, window_bounds = array<i64: 1, 200>}, {pipeline_mode = #tpu.pipeline_mode<synchronous>, transform_indices = @transform_9, window_bounds = array<i64: 1, 200>}, {pipeline_mode = #tpu.pipeline_mode<synchronous>, transform_indices = @transform_10, window_bounds = array<i64: 1, 200>}, {pipeline_mode = #tpu.pipeline_mode<synchronous>, transform_indices = @transform_11, window_bounds = array<i64: 200, 128>}, {pipeline_mode = #tpu.pipeline_mode<synchronous>, transform_indices = @transform_12, window_bounds = array<i64: 200, 128>}, {pipeline_mode = #tpu.pipeline_mode<synchronous>, transform_indices = @transform_13, window_bounds = array<i64: 200, 128>}, {pipeline_mode = #tpu.pipeline_mode<synchronous>, transform_indices = @transform_14, window_bounds = array<i64: 1, 128>}, {pipeline_mode = #tpu.pipeline_mode<synchronous>, transform_indices = @transform_15, window_bounds = array<i64: 128, 64>}, {pipeline_mode = #tpu.pipeline_mode<synchronous>, transform_indices = @transform_16, window_bounds = array<i64: 1, 64>}, {pipeline_mode = #tpu.pipeline_mode<synchronous>, transform_indices = @transform_17, window_bounds = array<i64: 1, 64>}, {pipeline_mode = #tpu.pipeline_mode<synchronous>, transform_indices = @transform_18, window_bounds = array<i64: 1, 1>}, {transform_indices = @transform_19, window_bounds = array<i64: 16, 1>}]} {
    %c0 = arith.constant 0 : index
    %c0_0 = arith.constant 0 : index
    %0 = vector.load %arg1[%c0, %c0_0] : memref<16x768xf32, #tpu.memory_space<vmem>>, vector<16x768xf32>
    %1 = arith.truncf %0 : vector<16x768xf32> to vector<16x768xbf16>
    %c0_1 = arith.constant 0 : index
    %c0_2 = arith.constant 0 : index
    %2 = vector.load %arg4[%c0_1, %c0_2] : memref<768x200xbf16, #tpu.memory_space<vmem>>, vector<768x200xbf16>
    %cst = arith.constant dense<0.000000e+00> : vector<16x200xf32>
    %3 = tpu.matmul %1, %2, %cst {dimension_numbers = #tpu.dot_dimension_numbers<[1], [0], [0], [1], [0, 0, 1, 1], [], []>} : vector<16x768xbf16>, vector<768x200xbf16>, vector<16x200xf32> -> vector<16x200xf32>
    %c0_3 = arith.constant 0 : index
    %c0_4 = arith.constant 0 : index
    %4 = vector.load %arg5[%c0_3, %c0_4] : memref<1x200xf32, #tpu.memory_space<vmem>>, vector<1x200xf32>
    %5 = vector.broadcast %4 : vector<1x200xf32> to vector<16x200xf32>
    %6 = arith.addf %3, %5 : vector<16x200xf32>
    %7 = arith.mulf %6, %6 : vector<16x200xf32>
    %8 = arith.mulf %6, %7 : vector<16x200xf32>
    %cst_5 = arith.constant 4.471500e-02 : f32
    %9 = vector.broadcast %cst_5 : f32 to vector<16x200xf32>
    %10 = arith.mulf %9, %8 : vector<16x200xf32>
    %11 = arith.addf %6, %10 : vector<16x200xf32>
    %cst_6 = arith.constant 0.797884583 : f32
    %12 = vector.broadcast %cst_6 : f32 to vector<16x200xf32>
    %13 = arith.mulf %12, %11 : vector<16x200xf32>
    %14 = math.tanh %13 : vector<16x200xf32>
    %cst_7 = arith.constant 1.000000e+00 : f32
    %15 = vector.broadcast %cst_7 : f32 to vector<16x200xf32>
    %16 = arith.addf %15, %14 : vector<16x200xf32>
    %cst_8 = arith.constant 5.000000e-01 : f32
    %17 = vector.broadcast %cst_8 : f32 to vector<16x200xf32>
    %18 = arith.mulf %17, %16 : vector<16x200xf32>
    %19 = arith.mulf %6, %18 : vector<16x200xf32>
    %c0_9 = arith.constant 0 : index
    %c0_10 = arith.constant 0 : index
    %20 = vector.load %arg6[%c0_9, %c0_10] : memref<1x200xf32, #tpu.memory_space<vmem>>, vector<1x200xf32>
    %c0_11 = arith.constant 0 : index
    %c0_12 = arith.constant 0 : index
    %21 = vector.load %arg7[%c0_11, %c0_12] : memref<1x200xf32, #tpu.memory_space<vmem>>, vector<1x200xf32>
    %cst_13 = arith.constant dense<0.000000e+00> : vector<16xf32>
    %22 = vector.multi_reduction <add>, %19, %cst_13 [1] : vector<16x200xf32> to vector<16xf32>
    %23 = vector.shape_cast %22 : vector<16xf32> to vector<16x1xf32>
    %cst_14 = arith.constant 2.000000e+02 : f32
    %24 = vector.broadcast %cst_14 : f32 to vector<16x1xf32>
    %25 = arith.divf %23, %24 : vector<16x1xf32>
    %26 = arith.mulf %19, %19 : vector<16x200xf32>
    %cst_15 = arith.constant dense<0.000000e+00> : vector<16xf32>
    %27 = vector.multi_reduction <add>, %26, %cst_15 [1] : vector<16x200xf32> to vector<16xf32>
    %28 = vector.shape_cast %27 : vector<16xf32> to vector<16x1xf32>
    %cst_16 = arith.constant 2.000000e+02 : f32
    %29 = vector.broadcast %cst_16 : f32 to vector<16x1xf32>
    %30 = arith.divf %28, %29 : vector<16x1xf32>
    %31 = arith.mulf %25, %25 : vector<16x1xf32>
    %32 = arith.subf %30, %31 : vector<16x1xf32>
    %cst_17 = arith.constant 0.000000e+00 : f32
    %33 = vector.broadcast %cst_17 : f32 to vector<16x1xf32>
    %34 = arith.maximumf %32, %33 : vector<16x1xf32>
    %35 = vector.broadcast %25 : vector<16x1xf32> to vector<16x200xf32>
    %36 = arith.subf %19, %35 : vector<16x200xf32>
    %cst_18 = arith.constant 9.99999974E-6 : f32
    %37 = vector.broadcast %cst_18 : f32 to vector<16x1xf32>
    %38 = arith.addf %34, %37 : vector<16x1xf32>
    %39 = math.rsqrt %38 : vector<16x1xf32>
    %40 = vector.broadcast %39 : vector<16x1xf32> to vector<16x200xf32>
    %41 = arith.mulf %36, %40 : vector<16x200xf32>
    %42 = vector.broadcast %20 : vector<1x200xf32> to vector<16x200xf32>
    %43 = arith.mulf %41, %42 : vector<16x200xf32>
    %44 = vector.broadcast %21 : vector<1x200xf32> to vector<16x200xf32>
    %45 = arith.addf %43, %44 : vector<16x200xf32>
    %c0_19 = arith.constant 0 : index
    %c0_20 = arith.constant 0 : index
    %46 = vector.load %arg2[%c0_19, %c0_20] : memref<16x32xf32, #tpu.memory_space<vmem>>, vector<16x32xf32>
    %c0_21 = arith.constant 0 : index
    %c0_22 = arith.constant 0 : index
    %47 = vector.load %arg3[%c0_21, %c0_22] : memref<16x32xf32, #tpu.memory_space<vmem>>, vector<16x32xf32>
    %48 = tpu.concatenate %46, %47 in 0 : vector<16x32xf32>, vector<16x32xf32> -> vector<32x32xf32>
    %49 = arith.truncf %48 : vector<32x32xf32> to vector<32x32xbf16>
    %c0_23 = arith.constant 0 : index
    %c0_24 = arith.constant 0 : index
    %50 = vector.load %arg8[%c0_23, %c0_24] : memref<32x200xbf16, #tpu.memory_space<vmem>>, vector<32x200xbf16>
    %cst_25 = arith.constant dense<0.000000e+00> : vector<32x200xf32>
    %51 = tpu.matmul %49, %50, %cst_25 {dimension_numbers = #tpu.dot_dimension_numbers<[1], [0], [0], [1], [0, 0, 1, 1], [], []>} : vector<32x32xbf16>, vector<32x200xbf16>, vector<32x200xf32> -> vector<32x200xf32>
    %c0_26 = arith.constant 0 : index
    %c0_27 = arith.constant 0 : index
    %52 = vector.load %arg9[%c0_26, %c0_27] : memref<1x200xf32, #tpu.memory_space<vmem>>, vector<1x200xf32>
    %53 = vector.broadcast %52 : vector<1x200xf32> to vector<32x200xf32>
    %54 = arith.addf %51, %53 : vector<32x200xf32>
    %55 = arith.mulf %54, %54 : vector<32x200xf32>
    %56 = arith.mulf %54, %55 : vector<32x200xf32>
    %cst_28 = arith.constant 4.471500e-02 : f32
    %57 = vector.broadcast %cst_28 : f32 to vector<32x200xf32>
    %58 = arith.mulf %57, %56 : vector<32x200xf32>
    %59 = arith.addf %54, %58 : vector<32x200xf32>
    %cst_29 = arith.constant 0.797884583 : f32
    %60 = vector.broadcast %cst_29 : f32 to vector<32x200xf32>
    %61 = arith.mulf %60, %59 : vector<32x200xf32>
    %62 = math.tanh %61 : vector<32x200xf32>
    %cst_30 = arith.constant 1.000000e+00 : f32
    %63 = vector.broadcast %cst_30 : f32 to vector<32x200xf32>
    %64 = arith.addf %63, %62 : vector<32x200xf32>
    %cst_31 = arith.constant 5.000000e-01 : f32
    %65 = vector.broadcast %cst_31 : f32 to vector<32x200xf32>
    %66 = arith.mulf %65, %64 : vector<32x200xf32>
    %67 = arith.mulf %54, %66 : vector<32x200xf32>
    %c0_32 = arith.constant 0 : index
    %c0_33 = arith.constant 0 : index
    %68 = vector.load %arg10[%c0_32, %c0_33] : memref<1x200xf32, #tpu.memory_space<vmem>>, vector<1x200xf32>
    %c0_34 = arith.constant 0 : index
    %c0_35 = arith.constant 0 : index
    %69 = vector.load %arg11[%c0_34, %c0_35] : memref<1x200xf32, #tpu.memory_space<vmem>>, vector<1x200xf32>
    %cst_36 = arith.constant dense<0.000000e+00> : vector<32xf32>
    %70 = vector.multi_reduction <add>, %67, %cst_36 [1] : vector<32x200xf32> to vector<32xf32>
    %71 = vector.shape_cast %70 : vector<32xf32> to vector<32x1xf32>
    %cst_37 = arith.constant 2.000000e+02 : f32
    %72 = vector.broadcast %cst_37 : f32 to vector<32x1xf32>
    %73 = arith.divf %71, %72 : vector<32x1xf32>
    %74 = arith.mulf %67, %67 : vector<32x200xf32>
    %cst_38 = arith.constant dense<0.000000e+00> : vector<32xf32>
    %75 = vector.multi_reduction <add>, %74, %cst_38 [1] : vector<32x200xf32> to vector<32xf32>
    %76 = vector.shape_cast %75 : vector<32xf32> to vector<32x1xf32>
    %cst_39 = arith.constant 2.000000e+02 : f32
    %77 = vector.broadcast %cst_39 : f32 to vector<32x1xf32>
    %78 = arith.divf %76, %77 : vector<32x1xf32>
    %79 = arith.mulf %73, %73 : vector<32x1xf32>
    %80 = arith.subf %78, %79 : vector<32x1xf32>
    %cst_40 = arith.constant 0.000000e+00 : f32
    %81 = vector.broadcast %cst_40 : f32 to vector<32x1xf32>
    %82 = arith.maximumf %80, %81 : vector<32x1xf32>
    %83 = vector.broadcast %73 : vector<32x1xf32> to vector<32x200xf32>
    %84 = arith.subf %67, %83 : vector<32x200xf32>
    %cst_41 = arith.constant 9.99999974E-6 : f32
    %85 = vector.broadcast %cst_41 : f32 to vector<32x1xf32>
    %86 = arith.addf %82, %85 : vector<32x1xf32>
    %87 = math.rsqrt %86 : vector<32x1xf32>
    %88 = vector.broadcast %87 : vector<32x1xf32> to vector<32x200xf32>
    %89 = arith.mulf %84, %88 : vector<32x200xf32>
    %90 = vector.broadcast %68 : vector<1x200xf32> to vector<32x200xf32>
    %91 = arith.mulf %89, %90 : vector<32x200xf32>
    %92 = vector.broadcast %69 : vector<1x200xf32> to vector<32x200xf32>
    %93 = arith.addf %91, %92 : vector<32x200xf32>
    %94 = vector.extract_strided_slice %93 {offsets = [0, 0], sizes = [16, 200], strides = [1, 1]} : vector<32x200xf32> to vector<16x200xf32>
    %95 = vector.extract_strided_slice %93 {offsets = [16, 0], sizes = [16, 200], strides = [1, 1]} : vector<32x200xf32> to vector<16x200xf32>
    %96 = arith.truncf %45 : vector<16x200xf32> to vector<16x200xbf16>
    %c0_42 = arith.constant 0 : index
    %c0_43 = arith.constant 0 : index
    %97 = vector.load %arg12[%c0_42, %c0_43] : memref<200x128xbf16, #tpu.memory_space<vmem>>, vector<200x128xbf16>
    %cst_44 = arith.constant dense<0.000000e+00> : vector<16x128xf32>
    %98 = tpu.matmul %96, %97, %cst_44 {dimension_numbers = #tpu.dot_dimension_numbers<[1], [0], [0], [1], [0, 0, 1, 1], [], []>} : vector<16x200xbf16>, vector<200x128xbf16>, vector<16x128xf32> -> vector<16x128xf32>
    %99 = arith.truncf %94 : vector<16x200xf32> to vector<16x200xbf16>
    %c0_45 = arith.constant 0 : index
    %c0_46 = arith.constant 0 : index
    %100 = vector.load %arg13[%c0_45, %c0_46] : memref<200x128xbf16, #tpu.memory_space<vmem>>, vector<200x128xbf16>
    %cst_47 = arith.constant dense<0.000000e+00> : vector<16x128xf32>
    %101 = tpu.matmul %99, %100, %cst_47 {dimension_numbers = #tpu.dot_dimension_numbers<[1], [0], [0], [1], [0, 0, 1, 1], [], []>} : vector<16x200xbf16>, vector<200x128xbf16>, vector<16x128xf32> -> vector<16x128xf32>
    %102 = arith.addf %98, %101 : vector<16x128xf32>
    %103 = arith.truncf %95 : vector<16x200xf32> to vector<16x200xbf16>
    %c0_48 = arith.constant 0 : index
    %c0_49 = arith.constant 0 : index
    %104 = vector.load %arg14[%c0_48, %c0_49] : memref<200x128xbf16, #tpu.memory_space<vmem>>, vector<200x128xbf16>
    %cst_50 = arith.constant dense<0.000000e+00> : vector<16x128xf32>
    %105 = tpu.matmul %103, %104, %cst_50 {dimension_numbers = #tpu.dot_dimension_numbers<[1], [0], [0], [1], [0, 0, 1, 1], [], []>} : vector<16x200xbf16>, vector<200x128xbf16>, vector<16x128xf32> -> vector<16x128xf32>
    %106 = arith.addf %102, %105 : vector<16x128xf32>
    %c0_51 = arith.constant 0 : index
    %c0_52 = arith.constant 0 : index
    %107 = vector.load %arg15[%c0_51, %c0_52] : memref<1x128xf32, #tpu.memory_space<vmem>>, vector<1x128xf32>
    %108 = vector.broadcast %107 : vector<1x128xf32> to vector<16x128xf32>
    %109 = arith.addf %106, %108 : vector<16x128xf32>
    %cst_53 = arith.constant 0.000000e+00 : f32
    %110 = vector.broadcast %cst_53 : f32 to vector<16x128xf32>
    %111 = arith.maximumf %109, %110 : vector<16x128xf32>
    %112 = arith.truncf %111 : vector<16x128xf32> to vector<16x128xbf16>
    %c0_54 = arith.constant 0 : index
    %c0_55 = arith.constant 0 : index
    %113 = vector.load %arg16[%c0_54, %c0_55] : memref<128x64xbf16, #tpu.memory_space<vmem>>, vector<128x64xbf16>
    %cst_56 = arith.constant dense<0.000000e+00> : vector<16x64xf32>
    %114 = tpu.matmul %112, %113, %cst_56 {dimension_numbers = #tpu.dot_dimension_numbers<[1], [0], [0], [1], [0, 0, 1, 1], [], []>} : vector<16x128xbf16>, vector<128x64xbf16>, vector<16x64xf32> -> vector<16x64xf32>
    %c0_57 = arith.constant 0 : index
    %c0_58 = arith.constant 0 : index
    %115 = vector.load %arg17[%c0_57, %c0_58] : memref<1x64xf32, #tpu.memory_space<vmem>>, vector<1x64xf32>
    %116 = vector.broadcast %115 : vector<1x64xf32> to vector<16x64xf32>
    %117 = arith.addf %114, %116 : vector<16x64xf32>
    %cst_59 = arith.constant 0.000000e+00 : f32
    %118 = vector.broadcast %cst_59 : f32 to vector<16x64xf32>
    %119 = arith.maximumf %117, %118 : vector<16x64xf32>
    %c0_60 = arith.constant 0 : index
    %c0_61 = arith.constant 0 : index
    %120 = vector.load %arg18[%c0_60, %c0_61] : memref<1x64xf32, #tpu.memory_space<vmem>>, vector<1x64xf32>
    %121 = vector.broadcast %120 : vector<1x64xf32> to vector<16x64xf32>
    %122 = arith.mulf %119, %121 : vector<16x64xf32>
    %cst_62 = arith.constant dense<0.000000e+00> : vector<16xf32>
    %123 = vector.multi_reduction <add>, %122, %cst_62 [1] : vector<16x64xf32> to vector<16xf32>
    %124 = vector.shape_cast %123 : vector<16xf32> to vector<16x1xf32>
    %c0_63 = arith.constant 0 : index
    %c0_64 = arith.constant 0 : index
    %125 = vector.load %arg19[%c0_63, %c0_64] : memref<1x1xf32, #tpu.memory_space<vmem>>, vector<1x1xf32>
    %126 = vector.broadcast %125 : vector<1x1xf32> to vector<16x1xf32>
    %127 = arith.addf %124, %126 : vector<16x1xf32>
    %128 = arith.negf %127 : vector<16x1xf32>
    %129 = math.exp %128 : vector<16x1xf32>
    %cst_65 = arith.constant 1.000000e+00 : f32
    %130 = vector.broadcast %cst_65 : f32 to vector<16x1xf32>
    %131 = arith.addf %130, %129 : vector<16x1xf32>
    %132 = arith.divf %130, %131 : vector<16x1xf32>
    %c0_66 = arith.constant 0 : index
    %c0_67 = arith.constant 0 : index
    %133 = vector.load %arg20[%c0_66, %c0_67] : memref<16x1xf32, #tpu.memory_space<vmem>>, vector<16x1xf32>
    tpu.vector_store %arg20[%c0_66, %c0_67], %132 {strides = array<i32>} : memref<16x1xf32, #tpu.memory_space<vmem>>, vector<16x1xf32>,
    return
  }
  func.func @transform_0(%arg0: i32) -> (i32, i32) {
    %c0_i32 = arith.constant 0 : i32
    %c0_i32_0 = arith.constant 0 : i32
    return %arg0, %c0_i32 : i32, i32
  }
  func.func @transform_1(%arg0: i32) -> (i32, i32) {
    %c0_i32 = arith.constant 0 : i32
    %c0_i32_0 = arith.constant 0 : i32
    return %arg0, %c0_i32 : i32, i32
  }
  func.func @transform_2(%arg0: i32) -> (i32, i32) {
    %c0_i32 = arith.constant 0 : i32
    %c0_i32_0 = arith.constant 0 : i32
    return %arg0, %c0_i32 : i32, i32
  }
  func.func @transform_3(%arg0: i32) -> (i32, i32) {
    %c0_i32 = arith.constant 0 : i32
    %c0_i32_0 = arith.constant 0 : i32
    %c0_i32_1 = arith.constant 0 : i32
    return %c0_i32, %c0_i32_0 : i32, i32
  }
  func.func @transform_4(%arg0: i32) -> (i32, i32) {
    %c0_i32 = arith.constant 0 : i32
    %c0_i32_0 = arith.constant 0 : i32
    %c0_i32_1 = arith.constant 0 : i32
    return %c0_i32, %c0_i32_0 : i32, i32
  }
  func.func @transform_5(%arg0: i32) -> (i32, i32) {
    %c0_i32 = arith.constant 0 : i32
    %c0_i32_0 = arith.constant 0 : i32
    %c0_i32_1 = arith.constant 0 : i32
    return %c0_i32, %c0_i32_0 : i32, i32
  }
  func.func @transform_6(%arg0: i32) -> (i32, i32) {
    %c0_i32 = arith.constant 0 : i32
    %c0_i32_0 = arith.constant 0 : i32
    %c0_i32_1 = arith.constant 0 : i32
    return %c0_i32, %c0_i32_0 : i32, i32
  }
  func.func @transform_7(%arg0: i32) -> (i32, i32) {
    %c0_i32 = arith.constant 0 : i32
    %c0_i32_0 = arith.constant 0 : i32
    %c0_i32_1 = arith.constant 0 : i32
    return %c0_i32, %c0_i32_0 : i32, i32
  }
  func.func @transform_8(%arg0: i32) -> (i32, i32) {
    %c0_i32 = arith.constant 0 : i32
    %c0_i32_0 = arith.constant 0 : i32
    %c0_i32_1 = arith.constant 0 : i32
    return %c0_i32, %c0_i32_0 : i32, i32
  }
  func.func @transform_9(%arg0: i32) -> (i32, i32) {
    %c0_i32 = arith.constant 0 : i32
    %c0_i32_0 = arith.constant 0 : i32
    %c0_i32_1 = arith.constant 0 : i32
    return %c0_i32, %c0_i32_0 : i32, i32
  }
  func.func @transform_10(%arg0: i32) -> (i32, i32) {
    %c0_i32 = arith.constant 0 : i32
    %c0_i32_0 = arith.constant 0 : i32
    %c0_i32_1 = arith.constant 0 : i32
    return %c0_i32, %c0_i32_0 : i32, i32
  }
  func.func @transform_11(%arg0: i32) -> (i32, i32) {
    %c0_i32 = arith.constant 0 : i32
    %c0_i32_0 = arith.constant 0 : i32
    %c0_i32_1 = arith.constant 0 : i32
    return %c0_i32, %c0_i32_0 : i32, i32
  }
  func.func @transform_12(%arg0: i32) -> (i32, i32) {
    %c0_i32 = arith.constant 0 : i32
    %c0_i32_0 = arith.constant 0 : i32
    %c0_i32_1 = arith.constant 0 : i32
    return %c0_i32, %c0_i32_0 : i32, i32
  }
  func.func @transform_13(%arg0: i32) -> (i32, i32) {
    %c0_i32 = arith.constant 0 : i32
    %c0_i32_0 = arith.constant 0 : i32
    %c0_i32_1 = arith.constant 0 : i32
    return %c0_i32, %c0_i32_0 : i32, i32
  }
  func.func @transform_14(%arg0: i32) -> (i32, i32) {
    %c0_i32 = arith.constant 0 : i32
    %c0_i32_0 = arith.constant 0 : i32
    %c0_i32_1 = arith.constant 0 : i32
    return %c0_i32, %c0_i32_0 : i32, i32
  }
  func.func @transform_15(%arg0: i32) -> (i32, i32) {
    %c0_i32 = arith.constant 0 : i32
    %c0_i32_0 = arith.constant 0 : i32
    %c0_i32_1 = arith.constant 0 : i32
    return %c0_i32, %c0_i32_0 : i32, i32
  }
  func.func @transform_16(%arg0: i32) -> (i32, i32) {
    %c0_i32 = arith.constant 0 : i32
    %c0_i32_0 = arith.constant 0 : i32
    %c0_i32_1 = arith.constant 0 : i32
    return %c0_i32, %c0_i32_0 : i32, i32
  }
  func.func @transform_17(%arg0: i32) -> (i32, i32) {
    %c0_i32 = arith.constant 0 : i32
    %c0_i32_0 = arith.constant 0 : i32
    %c0_i32_1 = arith.constant 0 : i32
    return %c0_i32, %c0_i32_0 : i32, i32
  }
  func.func @transform_18(%arg0: i32) -> (i32, i32) {
    %c0_i32 = arith.constant 0 : i32
    %c0_i32_0 = arith.constant 0 : i32
    %c0_i32_1 = arith.constant 0 : i32
    return %c0_i32, %c0_i32_0 : i32, i32
  }
  func.func @transform_19(%arg0: i32) -> (i32, i32) {
    %c0_i32 = arith.constant 0 : i32
    %c0_i32_0 = arith.constant 0 : i32
    return %arg0, %c0_i32 : i32, i32
  }
}

</mosaic_0001>

<bundles_post_ra>
// kernel: tpu_custom_call.1
= control target key start
LH: loop header
LB: loop body
LE: loop exit
PB: predicated region body
PF: predicated region fallthrough
CT: control target
= control target key end

     0   :  { %v2273_v1 = vmov 0   ;;  %vm954_vm0 = vcmask 261120   ;;  %vm838_vm1 = vcmask 588800   ;;  %vm1342_vm2 = vcmask 1043456   ;;  %s3166_s3 = inlined_call_operand.vmem [shape: bf16[768,200], index: 3, kind: input, shape index: {}]   ;;  %s3167_s7 = inlined_call_operand.vmem [shape: bf16[32,200], index: 7, kind: input, shape index: {}]   ;;  %s3168_s1 = inlined_call_operand.vmem [shape: f32[16,32], index: 1, kind: input, shape index: {}]   ;;  %s3169_s0 = inlined_call_operand.vmem [shape: f32[16,768], index: 0, kind: input, shape index: {}]   ;;  %s3170_s2 = inlined_call_operand.vmem [shape: f32[16,32], index: 2, kind: input, shape index: {}]   ;;  %s3171_s12 = inlined_call_operand.vmem [shape: bf16[200,128], index: 12, kind: input, shape index: {}]   ;;  %s3172_s8 = inlined_call_operand.vmem [shape: f32[1,200], index: 8, kind: input, shape index: {}]   ;;  %s3173_s11 = inlined_call_operand.vmem [shape: bf16[200,128], index: 11, kind: input, shape index: {}]   ;;  %s3174_s4 = inlined_call_operand.vmem [shape: f32[1,200], index: 4, kind: input, shape index: {}]   ;;  %s3175_s9 = inlined_call_operand.vmem [shape: f32[1,200], index: 9, kind: input, shape index: {}]   ;;  %s3176_s10 = inlined_call_operand.vmem [shape: f32[1,200], index: 10, kind: input, shape index: {}]   ;;  %s3177_s13 = inlined_call_operand.vmem [shape: bf16[200,128], index: 13, kind: input, shape index: {}]   ;;  %s3178_s5 = inlined_call_operand.vmem [shape: f32[1,200], index: 5, kind: input, shape index: {}]   ;;  %s3179_s6 = inlined_call_operand.vmem [shape: f32[1,200], index: 6, kind: input, shape index: {}]   ;;  %s3180_s15 = inlined_call_operand.vmem [shape: bf16[128,64], index: 15, kind: input, shape index: {}]   ;;  %s3181_s14 = inlined_call_operand.vmem [shape: f32[1,128], index: 14, kind: input, shape index: {}]   ;;  %s3182_s18 = inlined_call_operand.<no memory space> [shape: f32[1,1], index: 18, kind: input, shape index: {}]   ;;  %s3183_s16 = inlined_call_operand.vmem [shape: f32[1,64], index: 16, kind: input, shape index: {}]   ;;  %s3184_s17 = inlined_call_operand.vmem [shape: f32[1,64], index: 17, kind: input, shape index: {}]   ;;  %s3185_s19 = inlined_call_operand.vmem [shape: f32[16,1], index: 19, kind: output, shape index: {}]  }
   0x1   :  { %3190 = sst [smem:[#allocation3_spill]] %s3166_s3  ;;  %993 = vmatprep.mubr.bf16.mxu1 %v2273_v1  ;;  %v914_v54 = vld [vmem:[%s3170_s2] sm:$0xff]  ;;  %v915_v55 = vld [vmem:[%s3170_s2 + $0x8] sm:$0xff]  ;;  %vm2275_vm3 = vmmov 0   ;;  %vm1795_vm4 = vcmask 523264   ;;  %vm1823_vm5 = vcmask 7168  }
   0x2   :  { %3191 = sst [smem:[#allocation4_spill]] %s3167_s7  ;;  %s3194_s20 = sld [smem:[#allocation3_spill]]  ;;  %v917_v57 = vpack.c.bf16 %v915_v55, %v914_v54 }
   0x3   :  { %3192 = sst [smem:[#allocation5_spill]] %s3168_s1  ;;  %s3195_s22 = sld [smem:[#allocation4_spill]] }
   0x4   :  { %3193 = sst [smem:[#allocation6_spill]] %s3169_s0  ;;  %s3196_s25 = sld [smem:[#allocation5_spill]] }
   0x5   :  { %s3197_s1 = sld [smem:[#allocation6_spill]] }
   0x8   :  { %v2032_v0 = vld [vmem:[%s3194_s20 + $0x4] ss:$8 sps:$4 sm:$0xff]   ;;  %v2036_v3 = vld [vmem:[%s3194_s20] ss:$8 sps:$4 sm:$0xff]   ;;  %v2038_v5 = vld [vmem:[%s3194_s20 + $0x14] ss:$8 sps:$4 sm:$0xff]  }
   0x9   :  { %v2034_v2 = vld [vmem:[%s3195_s22 + $0x4] ss:$8 sps:$4 sm:$0xff]   ;;  %671 = vmatprep.subr.bf16.mxu0 %v2032_v0  ;;  %v2037_v4 = vld [vmem:[%s3195_s22] ss:$8 sps:$4 sm:$0xff]   ;;  %v2040_v6 = vld [vmem:[%s3195_s22 + $0x14] ss:$8 sps:$4 sm:$0xff]  }
   0xa   :  { %961 = vmatprep.subr.bf16.mxu1 %v2034_v2  ;;  %672 = vmatpush1.bf16.msra.mxu0 %v2036_v3  ;;  %v2042_v7 = vld [vmem:[%s3194_s20 + $0x10] ss:$8 sps:$4 sm:$0xff]   ;;  %v2044_v9 = vld [vmem:[%s3194_s20 + $0x24] ss:$8 sps:$4 sm:$0xff]   ;;  %v2046_v13 = vld [vmem:[%s3194_s20 + $0x20] ss:$8 sps:$4 sm:$0xff]  }
   0xb   :  { %962 = vmatpush1.bf16.msra.mxu1 %v2037_v4  ;;  %673 = vmatprep.subr.bf16.mxu0 %v2038_v5  ;;  %v2043_v8 = vld [vmem:[%s3195_s22 + $0x10] ss:$8 sps:$4 sm:$0xff]   ;;  %v912_v10 = vld [vmem:[%s3196_s25] sm:$0xff]  ;;  %v913_v11 = vld [vmem:[%s3196_s25 + $0x8] sm:$0xff] }
   0xc   :  { %963 = vmatprep.subr.bf16.mxu1 %v2040_v6  ;;  %v916_v12 = vpack.c.bf16 %v913_v11, %v912_v10  ;;  %v2047_v14 = vld [vmem:[%s3194_s20 + $0x34] ss:$8 sps:$4 sm:$0xff]   ;;  %v2049_v15 = vld [vmem:[%s3194_s20 + $0x30] ss:$8 sps:$4 sm:$0xff]   ;;  %v2050_v16 = vld [vmem:[%s3194_s20 + $0x44] ss:$8 sps:$4 sm:$0xff]  }
   0xd   :  { %v2052_v17 = vld [vmem:[%s3194_s20 + $0x40] ss:$8 sps:$4 sm:$0xff]   ;;  %v2053_v18 = vld [vmem:[%s3194_s20 + $0x54] ss:$8 sps:$4 sm:$0xff]   ;;  %v2055_v19 = vld [vmem:[%s3194_s20 + $0x50] ss:$8 sps:$4 sm:$0xff]  }
   0xe   :  { %674 = vmatpush1.bf16.msra.mxu0 %v2042_v7  ;;  %v2056_v20 = vld [vmem:[%s3194_s20 + $0x64] ss:$8 sps:$4 sm:$0xff]   ;;  %v2058_v21 = vld [vmem:[%s3194_s20 + $0x60] ss:$8 sps:$4 sm:$0xff]   ;;  %v2059_v22 = vld [vmem:[%s3194_s20 + $0x74] ss:$8 sps:$4 sm:$0xff]  }
   0xf   :  { %964 = vmatpush1.bf16.msra.mxu1 %v2043_v8  ;;  %675 = vmatprep.subr.bf16.mxu0 %v2044_v9  ;;  %v66_v23 = vld [vmem:[%s3197_s1 + $0x8] sm:$0xff]  ;;  %v72_v24 = vld [vmem:[%s3197_s1 + $0x38] sm:$0xff]  ;;  %v65_v44 = vld [vmem:[%s3197_s1] sm:$0xff] }
  0x10   :  { %1346 = vmatprep.subr.bf16.mxu1 %v2273_v1  ;;  %v78_v25 = vpack.c.bf16 %v72_v24, %v66_v23  ;;  %v2061_v26 = vld [vmem:[%s3194_s20 + $0x70] ss:$8 sps:$4 sm:$0xff]   ;;  %v2062_v27 = vld [vmem:[%s3194_s20 + $0x84] ss:$8 sps:$4 sm:$0xff]   ;;  %v2064_v28 = vld [vmem:[%s3194_s20 + $0x80] ss:$8 sps:$4 sm:$0xff]  }
  0x11   :  { %v2065_v29 = vld [vmem:[%s3194_s20 + $0x94] ss:$8 sps:$4 sm:$0xff]   ;;  %v2067_v30 = vld [vmem:[%s3194_s20 + $0x90] ss:$8 sps:$4 sm:$0xff]   ;;  %v2068_v31 = vld [vmem:[%s3194_s20 + $0xa4] ss:$8 sps:$4 sm:$0xff]  }
  0x12   :  { %1930 = vmatmul.mubr.msk.bf16.vlgmr.msra.gmra.mrb[0].mxu1 %vm954_vm0, %v916_v12  ;;  %676 = vmatpush1.bf16.msra.mxu0 %v2046_v13  ;;  %v2070_v32 = vld [vmem:[%s3194_s20 + $0xa0] ss:$8 sps:$4 sm:$0xff]   ;;  %v2071_v33 = vld [vmem:[%s3194_s20 + $0xb4] ss:$8 sps:$4 sm:$0xff]   ;;  %v2073_v34 = vld [vmem:[%s3194_s20 + $0xb0] ss:$8 sps:$4 sm:$0xff]  }
  0x13   :  { %1003 = vmatprep.mubr.bf16.mxu1 %v2273_v1  ;;  %677 = vmatprep.subr.bf16.mxu0 %v2047_v14  ;;  %v2074_v35 = vld [vmem:[%s3194_s20 + $0xc4] ss:$8 sps:$4 sm:$0xff]   ;;  %v2076_v36 = vld [vmem:[%s3194_s20 + $0xc0] ss:$8 sps:$4 sm:$0xff]   ;;  %v2077_v37 = vld [vmem:[%s3194_s20 + $0xd4] ss:$8 sps:$4 sm:$0xff]  }
  0x14   :  { %703 = vmatprep.mubr.bf16.mxu0 %v78_v25  ;;  %v2079_v38 = vld [vmem:[%s3194_s20 + $0xd0] ss:$8 sps:$4 sm:$0xff]   ;;  %v2080_v39 = vld [vmem:[%s3194_s20 + $0xe4] ss:$8 sps:$4 sm:$0xff]   ;;  %v2082_v40 = vld [vmem:[%s3194_s20 + $0xe0] ss:$8 sps:$4 sm:$0xff]  }
  0x15   :  { %v2083_v41 = vld [vmem:[%s3194_s20 + $0xf4] ss:$8 sps:$4 sm:$0xff]   ;;  %v2085_v42 = vld [vmem:[%s3194_s20 + $0xf0] ss:$8 sps:$4 sm:$0xff]   ;;  %v2088_v43 = vld [vmem:[%s3194_s20 + $0x104] ss:$8 sps:$4 sm:$0xff]  }
  0x16   :  { %678 = vmatpush1.bf16.msra.mxu0 %v2049_v15  ;;  %v71_v45 = vld [vmem:[%s3197_s1 + $0x30] sm:$0xff]  ;;  %v68_v46 = vld [vmem:[%s3197_s1 + $0x18] sm:$0xff]  ;;  %v74_v47 = vld [vmem:[%s3197_s1 + $0x48] sm:$0xff] }
  0x17   :  { %679 = vmatprep.subr.bf16.mxu0 %v2050_v16  ;;  %v77_v48 = vpack.c.bf16 %v71_v45, %v65_v44  ;;  %v2086_v49 = vld [vmem:[%s3194_s20 + $0x100] ss:$8 sps:$4 sm:$0xff]   ;;  %v80_v50 = vpack.c.bf16 %v74_v47, %v68_v46  ;;  %v2091_v51 = vld [vmem:[%s3194_s20 + $0x114] ss:$8 sps:$4 sm:$0xff]   ;;  %v2089_v52 = vld [vmem:[%s3194_s20 + $0x110] ss:$8 sps:$4 sm:$0xff]  }
  0x18   :  { %v2094_v53 = vld [vmem:[%s3194_s20 + $0x124] ss:$8 sps:$4 sm:$0xff]   ;;  %v2092_v56 = vld [vmem:[%s3194_s20 + $0x120] ss:$8 sps:$4 sm:$0xff]   ;;  %v2097_v58 = vld [vmem:[%s3194_s20 + $0x134] ss:$8 sps:$4 sm:$0xff]  }
  0x19   :  { %v2095_v59 = vld [vmem:[%s3194_s20 + $0x130] ss:$8 sps:$4 sm:$0xff]   ;;  %v2100_v60 = vld [vmem:[%s3194_s20 + $0x144] ss:$8 sps:$4 sm:$0xff]   ;;  %v2098_v61 = vld [vmem:[%s3194_s20 + $0x140] ss:$8 sps:$4 sm:$0xff]  }
  0x1a   :  { %680 = vmatpush1.bf16.msra.mxu0 %v2052_v17  ;;  %1931 = vmatmul.mubr.msk.bf16.gmra.mrb[4].mxu1 %vm954_vm0, %v917_v57  ;;  %v2103_v62 = vld [vmem:[%s3194_s20 + $0x154] ss:$8 sps:$4 sm:$0xff]   ;;  %v2101_v63 = vld [vmem:[%s3194_s20 + $0x150] ss:$8 sps:$4 sm:$0xff]   ;;  %v2106_v0 = vld [vmem:[%s3194_s20 + $0x164] ss:$8 sps:$4 sm:$0xff]  }
  0x1b   :  { %681 = vmatprep.subr.bf16.mxu0 %v2053_v18  ;;  %v2104_v2 = vld [vmem:[%s3194_s20 + $0x160] ss:$8 sps:$4 sm:$0xff]   ;;  %v2109_v3 = vld [vmem:[%s3194_s20 + $0x174] ss:$8 sps:$4 sm:$0xff]   ;;  %v2107_v4 = vld [vmem:[%s3194_s20 + $0x170] ss:$8 sps:$4 sm:$0xff]  }
  0x1c   :  { %v2112_v5 = vld [vmem:[%s3194_s20 + $0x184] ss:$8 sps:$4 sm:$0xff]   ;;  %v2110_v6 = vld [vmem:[%s3194_s20 + $0x180] ss:$8 sps:$4 sm:$0xff]   ;;  %v2115_v7 = vld [vmem:[%s3194_s20 + $0x194] ss:$8 sps:$4 sm:$0xff]  }
  0x1d   :  { %v2113_v8 = vld [vmem:[%s3194_s20 + $0x190] ss:$8 sps:$4 sm:$0xff]   ;;  %v2118_v9 = vld [vmem:[%s3194_s20 + $0x1a4] ss:$8 sps:$4 sm:$0xff]   ;;  %v2116_v10 = vld [vmem:[%s3194_s20 + $0x1a0] ss:$8 sps:$4 sm:$0xff]  }
  0x1e   :  { %682 = vmatpush1.bf16.msra.mxu0 %v2055_v19  ;;  %v2121_v11 = vld [vmem:[%s3194_s20 + $0x1b4] ss:$8 sps:$4 sm:$0xff]   ;;  %v2119_v12 = vld [vmem:[%s3194_s20 + $0x1b0] ss:$8 sps:$4 sm:$0xff]   ;;  %v2124_v13 = vld [vmem:[%s3194_s20 + $0x1c4] ss:$8 sps:$4 sm:$0xff]  }
  0x1f   :  { %683 = vmatprep.subr.bf16.mxu0 %v2056_v20  ;;  %v2122_v14 = vld [vmem:[%s3194_s20 + $0x1c0] ss:$8 sps:$4 sm:$0xff]   ;;  %v2127_v15 = vld [vmem:[%s3194_s20 + $0x1d4] ss:$8 sps:$4 sm:$0xff]   ;;  %v2125_v16 = vld [vmem:[%s3194_s20 + $0x1d0] ss:$8 sps:$4 sm:$0xff]  }
  0x20   :  { %v2130_v17 = vld [vmem:[%s3194_s20 + $0x1e4] ss:$8 sps:$4 sm:$0xff]   ;;  %v2128_v18 = vld [vmem:[%s3194_s20 + $0x1e0] ss:$8 sps:$4 sm:$0xff]   ;;  %v2133_v19 = vld [vmem:[%s3194_s20 + $0x1f4] ss:$8 sps:$4 sm:$0xff]  }
  0x21   :  { %v2131_v20 = vld [vmem:[%s3194_s20 + $0x1f0] ss:$8 sps:$4 sm:$0xff]   ;;  %v2136_v23 = vld [vmem:[%s3194_s20 + $0x204] ss:$8 sps:$4 sm:$0xff]   ;;  %v2152_v45 = vld [vmem:[%s3194_s20 + $0x260] ss:$8 sps:$4 sm:$0xff]  }
  0x22   :  { %684 = vmatpush1.bf16.msra.mxu0 %v2058_v21  ;;  %v67_v21 = vld [vmem:[%s3197_s1 + $0x10] sm:$0xff]  ;;  %v70_v24 = vld [vmem:[%s3197_s1 + $0x28] sm:$0xff]  ;;  %v76_v25 = vld [vmem:[%s3197_s1 + $0x58] sm:$0xff] }
  0x23   :  { %685 = vmatprep.subr.bf16.mxu0 %v2059_v22  ;;  %v73_v22 = vld [vmem:[%s3197_s1 + $0x40] sm:$0xff]  ;;  %v2157_v46 = vld [vmem:[%s3194_s20 + $0x274] ss:$8 sps:$4 sm:$0xff]   ;;  %v2155_v47 = vld [vmem:[%s3194_s20 + $0x270] ss:$8 sps:$4 sm:$0xff]  }
  0x24   :  { %v2186_v44 = vld [vmem:[%s3171_s12 + $0x20] sm:$0xff]   ;;  %v2169_v54 = vld [vmem:[%s3194_s20 + $0x2b4] ss:$8 sps:$4 sm:$0xff]   ;;  %v2167_v55 = vld [vmem:[%s3194_s20 + $0x2b0] ss:$8 sps:$4 sm:$0xff]  }
  0x25   :  { %v2170_v57 = vld [vmem:[%s3194_s20 + $0x2c0] ss:$8 sps:$4 sm:$0xff]  }
  0x26   :  { %686 = vmatpush1.bf16.msra.mxu0 %v2061_v26  ;;  %v79_v26 = vpack.c.bf16 %v73_v22, %v67_v21 }
  0x27   :  { %687 = vmatprep.subr.bf16.mxu0 %v2062_v27  ;;  %v2134_v27 = vld [vmem:[%s3194_s20 + $0x200] ss:$8 sps:$4 sm:$0xff]  }
  0x2a   :  { %688 = vmatpush1.bf16.msra.mxu0 %v2064_v28  ;;  %v82_v28 = vpack.c.bf16 %v76_v25, %v70_v24 }
  0x2b   :  { %689 = vmatprep.subr.bf16.mxu0 %v2065_v29  ;;  %v2139_v29 = vld [vmem:[%s3194_s20 + $0x214] ss:$8 sps:$4 sm:$0xff]  }
  0x2e   :  { %690 = vmatpush1.bf16.msra.mxu0 %v2067_v30  ;;  %v2137_v30 = vld [vmem:[%s3194_s20 + $0x210] ss:$8 sps:$4 sm:$0xff]  }
  0x2f   :  { %691 = vmatprep.subr.bf16.mxu0 %v2068_v31  ;;  %v2142_v31 = vld [vmem:[%s3194_s20 + $0x224] ss:$8 sps:$4 sm:$0xff]  }
  0x32   :  { %692 = vmatpush1.bf16.msra.mxu0 %v2070_v32  ;;  %v2140_v32 = vld [vmem:[%s3194_s20 + $0x220] ss:$8 sps:$4 sm:$0xff]  }
  0x33   :  { %693 = vmatprep.subr.bf16.mxu0 %v2071_v33  ;;  %v2182_v33 = vld [vmem:[%s3171_s12] sm:$0xff]  }
  0x34   :  { %1347 = vmatpush1.bf16.msra.mxu1 %v2182_v33 }
  0x35   :  { %1348 = vmatprep.subr.bf16.mxu1 %v2273_v1 }
  0x36   :  { %694 = vmatpush1.bf16.msra.mxu0 %v2073_v34  ;;  %v2145_v34 = vld [vmem:[%s3194_s20 + $0x234] ss:$8 sps:$4 sm:$0xff]  }
  0x37   :  { %695 = vmatprep.subr.bf16.mxu0 %v2074_v35  ;;  %v2183_v35 = vld [vmem:[%s3171_s12 + $0x8] sm:$0xff]  }
  0x38   :  { %1349 = vmatpush1.bf16.msra.mxu1 %v2183_v35 }
  0x39   :  { %1350 = vmatprep.subr.bf16.mxu1 %v2273_v1 }
  0x3a   :  { %696 = vmatpush1.bf16.msra.mxu0 %v2076_v36  ;;  %v2143_v36 = vld [vmem:[%s3194_s20 + $0x230] ss:$8 sps:$4 sm:$0xff]  }
  0x3b   :  { %697 = vmatprep.subr.bf16.mxu0 %v2077_v37  ;;  %v2148_v37 = vld [vmem:[%s3194_s20 + $0x244] ss:$8 sps:$4 sm:$0xff]  }
  0x3e   :  { %698 = vmatpush1.bf16.msra.mxu0 %v2079_v38  ;;  %v2184_v38 = vld [vmem:[%s3171_s12 + $0x10] sm:$0xff]  }
  0x3f   :  { %699 = vmatprep.subr.bf16.mxu0 %v2080_v39  ;;  %v2146_v39 = vld [vmem:[%s3194_s20 + $0x240] ss:$8 sps:$4 sm:$0xff]   ;;  %1351 = vmatpush1.bf16.msra.mxu1 %v2184_v38 }
  0x40   :  { %1352 = vmatprep.subr.bf16.mxu1 %v2273_v1 }
  0x42   :  { %700 = vmatpush1.bf16.msra.mxu0 %v2082_v40  ;;  %v2151_v40 = vld [vmem:[%s3194_s20 + $0x254] ss:$8 sps:$4 sm:$0xff]  }
  0x43   :  { %701 = vmatprep.subr.bf16.mxu0 %v2083_v41  ;;  %v2185_v41 = vld [vmem:[%s3171_s12 + $0x18] sm:$0xff]  }
  0x44   :  { %1353 = vmatpush1.bf16.msra.mxu1 %v2185_v41 }
  0x45   :  { %1354 = vmatprep.subr.bf16.mxu1 %v2273_v1 }
  0x46   :  { %702 = vmatpush1.bf16.msra.mxu0 %v2085_v42  ;;  %v2149_v42 = vld [vmem:[%s3194_s20 + $0x250] ss:$8 sps:$4 sm:$0xff]  }
  0x47   :  { %714 = vmatprep.subr.bf16.mxu0 %v2088_v43  ;;  %v2154_v43 = vld [vmem:[%s3194_s20 + $0x264] ss:$8 sps:$4 sm:$0xff]  }
  0x48   :  { %1355 = vmatpush1.bf16.msra.mxu1 %v2186_v44 }
  0x49   :  { %704 = vmatmul.mubr.bf16.vlgmr.msra.gmra.mrb[0].mxu0 %v77_v48  ;;  %1356 = vmatprep.subr.bf16.mxu1 %v2273_v1  ;;  %v2160_v48 = vld [vmem:[%s3194_s20 + $0x284] ss:$8 sps:$4 sm:$0xff]  }
  0x4a   :  { %715 = vmatpush1.bf16.msra.mxu0 %v2086_v49  ;;  %746 = vmatprep.mubr.bf16.mxu0 %v80_v50  ;;  %v2158_v49 = vld [vmem:[%s3194_s20 + $0x280] ss:$8 sps:$4 sm:$0xff]   ;;  %v2163_v50 = vld [vmem:[%s3194_s20 + $0x294] ss:$8 sps:$4 sm:$0xff]  }
  0x4b   :  { %716 = vmatprep.subr.bf16.mxu0 %v2091_v51  ;;  %v2161_v51 = vld [vmem:[%s3194_s20 + $0x290] ss:$8 sps:$4 sm:$0xff]  }
  0x4e   :  { %717 = vmatpush1.bf16.msra.mxu0 %v2089_v52  ;;  %v2166_v52 = vld [vmem:[%s3194_s20 + $0x2a4] ss:$8 sps:$4 sm:$0xff]  }
  0x4f   :  { %718 = vmatprep.subr.bf16.mxu0 %v2094_v53  ;;  %v2164_v53 = vld [vmem:[%s3194_s20 + $0x2a0] ss:$8 sps:$4 sm:$0xff]  }
  0x52   :  { %719 = vmatpush1.bf16.msra.mxu0 %v2092_v56  ;;  %v2172_v56 = vld [vmem:[%s3194_s20 + $0x2c4] ss:$8 sps:$4 sm:$0xff]  }
  0x53   :  { %720 = vmatprep.subr.bf16.mxu0 %v2097_v58  ;;  %v2175_v58 = vld [vmem:[%s3194_s20 + $0x2d4] ss:$8 sps:$4 sm:$0xff]  }
  0x56   :  { %721 = vmatpush1.bf16.msra.mxu0 %v2095_v59  ;;  %v2173_v59 = vld [vmem:[%s3194_s20 + $0x2d0] ss:$8 sps:$4 sm:$0xff]  }
  0x57   :  { %722 = vmatprep.subr.bf16.mxu0 %v2100_v60  ;;  %v2178_v60 = vld [vmem:[%s3194_s20 + $0x2e4] ss:$8 sps:$4 sm:$0xff]  }
  0x5a   :  { %723 = vmatpush1.bf16.msra.mxu0 %v2098_v61  ;;  %v2176_v61 = vld [vmem:[%s3194_s20 + $0x2e0] ss:$8 sps:$4 sm:$0xff]  }
  0x5b   :  { %724 = vmatprep.subr.bf16.mxu0 %v2103_v62  ;;  %v2181_v62 = vld [vmem:[%s3194_s20 + $0x2f4] ss:$8 sps:$4 sm:$0xff]  }
  0x5e   :  { %725 = vmatpush1.bf16.msra.mxu0 %v2101_v63  ;;  %v2179_v63 = vld [vmem:[%s3194_s20 + $0x2f0] ss:$8 sps:$4 sm:$0xff]  }
  0x5f   :  { %726 = vmatprep.subr.bf16.mxu0 %v2106_v0  ;;  %v69_v0 = vld [vmem:[%s3197_s1 + $0x20] sm:$0xff] }
  0x62   :  { %727 = vmatpush1.bf16.msra.mxu0 %v2104_v2  ;;  %v75_v2 = vld [vmem:[%s3197_s1 + $0x50] sm:$0xff] }
  0x63   :  { %728 = vmatprep.subr.bf16.mxu0 %v2109_v3  ;;  %v81_v3 = vpack.c.bf16 %v75_v2, %v69_v0 }
  0x66   :  { %729 = vmatpush1.bf16.msra.mxu0 %v2107_v4  ;;  %v181_v4 = vlaneseq }
  0x67   :  { %730 = vmatprep.subr.bf16.mxu0 %v2112_v5 }
  0x68   :  { %v182_v5 = vshrl.u32 %v181_v4, 7  ;;  %v2187_v4 = vld [vmem:[%s3171_s12 + $0x28] sm:$0xff]  }
  0x69   :  { %1357 = vmatpush1.bf16.msra.mxu1 %v2187_v4 }
  0x6a   :  { %731 = vmatpush1.bf16.msra.mxu0 %v2110_v6  ;;  %v2749_v6 = vsub.s32 0, %v182_v5  ;;  %1358 = vmatprep.subr.bf16.mxu1 %v2273_v1 }
  0x6b   :  { %732 = vmatprep.subr.bf16.mxu0 %v2115_v7  ;;  %v922_v7 = vld [vmem:[%s3172_s8] sm:$0x3] }
  0x6e   :  { %733 = vmatpush1.bf16.msra.mxu0 %v2113_v8  ;;  %v2754_v8 = vsub.s32 1, %v182_v5  ;;  %v2188_v5 = vld [vmem:[%s3171_s12 + $0x30] sm:$0xff]  }
  0x6f   :  { %734 = vmatprep.subr.bf16.mxu0 %v2118_v9  ;;  %v2757_v9 = vrot.slane %v922_v7, %v2749_v6  ;;  %1359 = vmatpush1.bf16.msra.mxu1 %v2188_v5 }
  0x70   :  { %1360 = vmatprep.subr.bf16.mxu1 %v2273_v1 }
  0x72   :  { %735 = vmatpush1.bf16.msra.mxu0 %v2116_v10  ;;  %v2760_v10 = vrot.slane %v922_v7, %v2754_v8  ;;  %v2189_v7 = vld [vmem:[%s3171_s12 + $0x38] sm:$0xff]  }
  0x73   :  { %736 = vmatprep.subr.bf16.mxu0 %v2121_v11  ;;  %1361 = vmatpush1.bf16.msra.mxu1 %v2189_v7 }
  0x74   :  { %1362 = vmatprep.subr.bf16.mxu1 %v2273_v1 }
  0x76   :  { %737 = vmatpush1.bf16.msra.mxu0 %v2119_v12 }
  0x77   :  { %738 = vmatprep.subr.bf16.mxu0 %v2124_v13 }
  0x7a   :  { %739 = vmatpush1.bf16.msra.mxu0 %v2122_v14 }
  0x7b   :  { %740 = vmatprep.subr.bf16.mxu0 %v2127_v15 }
  0x7e   :  { %741 = vmatpush1.bf16.msra.mxu0 %v2125_v16 }
  0x7f   :  { %742 = vmatprep.subr.bf16.mxu0 %v2130_v17 }
  0x82   :  { %743 = vmatpush1.bf16.msra.mxu0 %v2128_v18 }
  0x83   :  { %744 = vmatprep.subr.bf16.mxu0 %v2133_v19 }
  0x86   :  { %745 = vmatpush1.bf16.msra.mxu0 %v2131_v20 }
  0x87   :  { %757 = vmatprep.subr.bf16.mxu0 %v2136_v23 }
  0x89   :  { %747 = vmatmul.mubr.bf16.vlgmr.msra.gmra.mrb[0].mxu0 %v79_v26 }
  0x8a   :  { %758 = vmatpush1.bf16.msra.mxu0 %v2134_v27  ;;  %789 = vmatprep.mubr.bf16.mxu0 %v82_v28 }
  0x8b   :  { %759 = vmatprep.subr.bf16.mxu0 %v2139_v29 }
  0x8e   :  { %760 = vmatpush1.bf16.msra.mxu0 %v2137_v30 }
  0x8f   :  { %761 = vmatprep.subr.bf16.mxu0 %v2142_v31 }
  0x92   :  { %762 = vmatpush1.bf16.msra.mxu0 %v2140_v32 }
  0x93   :  { %763 = vmatprep.subr.bf16.mxu0 %v2145_v34 }
  0x96   :  { %764 = vmatpush1.bf16.msra.mxu0 %v2143_v36 }
  0x97   :  { %765 = vmatprep.subr.bf16.mxu0 %v2148_v37 }
  0x9a   :  { %766 = vmatpush1.bf16.msra.mxu0 %v2146_v39 }
  0x9b   :  { %767 = vmatprep.subr.bf16.mxu0 %v2151_v40 }
  0x9e   :  { %768 = vmatpush1.bf16.msra.mxu0 %v2149_v42 }
  0x9f   :  { %769 = vmatprep.subr.bf16.mxu0 %v2154_v43 }
  0xa2   :  { %770 = vmatpush1.bf16.msra.mxu0 %v2152_v45 }
  0xa3   :  { %771 = vmatprep.subr.bf16.mxu0 %v2157_v46 }
  0xa6   :  { %772 = vmatpush1.bf16.msra.mxu0 %v2155_v47 }
  0xa7   :  { %773 = vmatprep.subr.bf16.mxu0 %v2160_v48 }
  0xaa   :  { %774 = vmatpush1.bf16.msra.mxu0 %v2158_v49 }
  0xab   :  { %775 = vmatprep.subr.bf16.mxu0 %v2163_v50 }
  0xae   :  { %776 = vmatpush1.bf16.msra.mxu0 %v2161_v51 }
  0xaf   :  { %777 = vmatprep.subr.bf16.mxu0 %v2166_v52 }
  0xb2   :  { %778 = vmatpush1.bf16.msra.mxu0 %v2164_v53 }
  0xb3   :  { %779 = vmatprep.subr.bf16.mxu0 %v2169_v54 }
  0xb6   :  { %780 = vmatpush1.bf16.msra.mxu0 %v2167_v55 }
  0xb7   :  { %781 = vmatprep.subr.bf16.mxu0 %v2172_v56 }
  0xba   :  { %782 = vmatpush1.bf16.msra.mxu0 %v2170_v57 }
  0xbb   :  { %783 = vmatprep.subr.bf16.mxu0 %v2175_v58 }
  0xbe   :  { %784 = vmatpush1.bf16.msra.mxu0 %v2173_v59 }
  0xbf   :  { %785 = vmatprep.subr.bf16.mxu0 %v2178_v60 }
  0xc2   :  { %786 = vmatpush1.bf16.msra.mxu0 %v2176_v61 }
  0xc3   :  { %787 = vmatprep.subr.bf16.mxu0 %v2181_v62 }
  0xc6   :  { %788 = vmatpush1.bf16.msra.mxu0 %v2179_v63 }
  0xc9   :  { %790 = vmatmul.mubr.bf16.vlgmr.msra.gmra.mrb[0].mxu0 %v81_v3 }
  0xe5   :  { %v995_v11 = vpop.f32.mrb[0].mxu1 }
  0xe6   :  { %v996_v12 = vadd.f32 %v995_v11, %v2757_v9  ;;  %v997_v13 = vpop.f32.mrb[1].mxu1  ;;  %v2190_v11 = vld [vmem:[%s3171_s12 + $0x40] sm:$0xff]  }
  0xe7   :  { %v998_v14 = vadd.f32 %v997_v13, %v2760_v10  ;;  %v999_v15 = vpop.f32.mrb[2].mxu1  ;;  %1363 = vmatpush1.bf16.msra.mxu1 %v2190_v11 }
  0xe8   :  { %v1014_v16 = vmul.f32 %v996_v12, %v996_v12  ;;  %v1000_v17 = vadd.f32 %v999_v15, %v2757_v9  ;;  %v1001_v18 = vpop.f32.mrb[3].mxu1  ;;  %1364 = vmatprep.subr.bf16.mxu1 %v2273_v1 }
  0xe9   :  { %v1015_v19 = vmul.f32 %v998_v14, %v998_v14  ;;  %v1002_v20 = vadd.f32 %v1001_v18, %v2760_v10  ;;  %v2193_v18 = vld [vmem:[%s3171_s12 + $0x58] sm:$0xff]  }
  0xea   :  { %v1022_v21 = vmul.f32 %v1014_v16, %v996_v12  ;;  %v1016_v22 = vmul.f32 %v1000_v17, %v1000_v17 }
  0xeb   :  { %v1023_v23 = vmul.f32 %v1015_v19, %v998_v14  ;;  %v1017_v24 = vmul.f32 %v1002_v20, %v1002_v20  ;;  %v2194_v19 = vld [vmem:[%s3171_s12 + $0x60] ss:$0 sps:$4 sm:$0xff]  }
  0xec   :  { %v1030_v25 = vmul.f32 0.044715, %v1022_v21  ;;  %v1024_v26 = vmul.f32 %v1016_v22, %v1000_v17 }
  0xed   :  { %v1031_v27 = vmul.f32 0.044715, %v1023_v23  ;;  %v1025_v28 = vmul.f32 %v1017_v24, %v1002_v20 }
  0xee   :  { %v1038_v29 = vadd.f32 %v1030_v25, %v996_v12  ;;  %v1032_v30 = vmul.f32 0.044715, %v1024_v26 }
  0xef   :  { %v1039_v31 = vadd.f32 %v1031_v27, %v998_v14  ;;  %v1033_v32 = vmul.f32 0.044715, %v1025_v28 }
  0xf0   :  { %v1046_v33 = vmul.f32 0.7978846, %v1038_v29  ;;  %v1040_v34 = vadd.f32 %v1032_v30, %v1000_v17 }
  0xf1   :  { %v1047_v35 = vmul.f32 0.7978846, %v1039_v31  ;;  %v1041_v36 = vadd.f32 %v1033_v32, %v1002_v20 }
  0xf2   :  { %2229 = vtanh.f32 %v1046_v33  ;;  %v1048_v37 = vmul.f32 0.7978846, %v1040_v34  ;;  %v179_v34 = vld [vmem:[%s3174_s4] sm:$0x3] }
  0xf3   :  { %2231 = vtanh.f32 %v1047_v35  ;;  %v1049_v38 = vmul.f32 0.7978846, %v1041_v36 }
  0xf4   :  { %2233 = vtanh.f32 %v1048_v37 }
  0xf5   :  { %2235 = vtanh.f32 %v1049_v38 }
  0xfc   :  { %v2230_v39 = vpop.eup %2229 }
  0xfd   :  { %v2232_v40 = vpop.eup %2231  ;;  %v1062_v41 = vadd.f32 1.0, %v2230_v39 }
  0xfe   :  { %v2234_v42 = vpop.eup %2233  ;;  %v1063_v43 = vadd.f32 1.0, %v2232_v40 }
  0xff   :  { %v2236_v44 = vpop.eup %2235  ;;  %v1070_v45 = vmul.f32 0.5, %v1062_v41  ;;  %v1064_v46 = vadd.f32 1.0, %v2234_v42  ;;  %v184_v42 = vrot.slane %v179_v34, %v2749_v6 }
 0x100   :  { %v1071_v47 = vmul.f32 0.5, %v1063_v43  ;;  %v1065_v48 = vadd.f32 1.0, %v2236_v44 }
 0x101   :  { %v2766_v49 = vmul.f32 %v1070_v45, %v996_v12  ;;  %v1072_v50 = vmul.f32 0.5, %v1064_v46  ;;  %v1005_v12 = vpop.f32.mrb[4].mxu1  ;;  %v188_v46 = vrot.slane %v179_v34, %v2754_v8 }
 0x102   :  { %v2768_v51 = vmul.f32 %v1071_v47, %v998_v14  ;;  %v1073_v52 = vmul.f32 0.5, %v1065_v48  ;;  %v1007_v13 = vpop.f32.mrb[5].mxu1  ;;  %v2191_v14 = vld [vmem:[%s3171_s12 + $0x48] sm:$0xff]   ;;  %v2827_v22 = vadd.f32 %v1005_v12, %v2757_v9 }
 0x103   :  { %v1108_v53 = vmul.f32 %v2766_v49, %v2766_v49  ;;  %v2772_v54 = vmul.f32 %v1072_v50, %v1000_v17  ;;  %v1009_v15 = vpop.f32.mrb[6].mxu1  ;;  %1365 = vmatpush1.bf16.msra.mxu1 %v2191_v14  ;;  %v2192_v17 = vld [vmem:[%s3171_s12 + $0x50] sm:$0xff]   ;;  %v2824_v21 = vadd.f32 %v1007_v13, %v2760_v10 }
 0x104   :  { %v1088_v55 = vsel %vm838_vm1, %v2768_v51, 0.0  ;;  %v1109_v56 = vmul.f32 %v2768_v51, %v2768_v51  ;;  %v2778_v57 = vmul.f32 %v1073_v52, %v1002_v20  ;;  %v1011_v16 = vpop.f32.mrb[7].mxu1  ;;  %1366 = vmatprep.subr.bf16.mxu1 %v2273_v1  ;;  %v1344_v20 = vsel %vm1342_vm2, %v2194_v19, 0 }
 0x105   :  { %v1089_v58 = vadd.f32 %v1088_v55, %v2766_v49  ;;  %v1110_v59 = vmul.f32 %v2772_v54, %v2772_v54  ;;  %v2830_v23 = vadd.f32 %v1011_v16, %v2760_v10  ;;  %v2833_v24 = vadd.f32 %v1009_v15, %v2757_v9 }
 0x106   :  { %v1116_v60 = vsel %vm838_vm1, %v1109_v56, 0.0  ;;  %v1092_v61 = vsel %vm838_vm1, %v2778_v57, 0.0  ;;  %v1111_v62 = vmul.f32 %v2778_v57, %v2778_v57  ;;  %v1019_v25 = vmul.f32 %v2824_v21, %v2824_v21 }
 0x107   :  { %1090 = vadd.xlane.f32.xlu0 %v1089_v58  ;;  %v1117_v63 = vadd.f32 %v1116_v60, %v1108_v53  ;;  %v1093_v0 = vadd.f32 %v1092_v61, %v2772_v54  ;;  %1367 = vmatpush1.bf16.msra.mxu1 %v2192_v17  ;;  %v1018_v26 = vmul.f32 %v2827_v22, %v2827_v22 }
 0x108   :  { %v1120_v2 = vsel %vm838_vm1, %v1111_v62, 0.0  ;;  %1368 = vmatprep.subr.bf16.mxu1 %v2273_v1  ;;  %v1021_v27 = vmul.f32 %v2830_v23, %v2830_v23  ;;  %v1020_v29 = vmul.f32 %v2833_v24, %v2833_v24  ;;  %v1027_v10 = vmul.f32 %v1019_v25, %v2824_v21 }
 0x109   :  { %1118 = vadd.xlane.f32.xlu1 %v1117_v63  ;;  %v1121_v3 = vadd.f32 %v1120_v2, %v1110_v59  ;;  %v1026_v9 = vmul.f32 %v1018_v26, %v2827_v22 }
 0x10a   :  { %v1029_v35 = vmul.f32 %v1021_v27, %v2830_v23  ;;  %v1028_v37 = vmul.f32 %v1020_v29, %v2833_v24  ;;  %v1035_v40 = vmul.f32 0.044715, %v1027_v10 }
 0x10b   :  { %1094 = vadd.xlane.f32.xlu0 %v1093_v0  ;;  %1369 = vmatpush1.bf16.msra.mxu1 %v2193_v18  ;;  %v1034_v43 = vmul.f32 0.044715, %v1026_v9 }
 0x10c   :  { %1370 = vmatprep.subr.bf16.mxu1 %v2273_v1  ;;  %v1037_v47 = vmul.f32 0.044715, %v1029_v35  ;;  %v1036_v50 = vmul.f32 0.044715, %v1028_v37  ;;  %v1043_v55 = vadd.f32 %v1035_v40, %v2824_v21 }
 0x10d   :  { %1122 = vadd.xlane.f32.xlu1 %v1121_v3  ;;  %v1042_v60 = vadd.f32 %v1034_v43, %v2827_v22 }
 0x10e   :  { %v1045_v63 = vadd.f32 %v1037_v47, %v2830_v23  ;;  %v1044_v5 = vadd.f32 %v1036_v50, %v2833_v24  ;;  %v1051_v12 = vmul.f32 0.7978846, %v1043_v55 }
 0x10f   :  { %1371 = vmatpush1.bf16.msra.mxu1 %v1344_v20  ;;  %v1050_v16 = vmul.f32 0.7978846, %v1042_v60 }
 0x110   :  { %1468 = vmatprep.subr.bf16.mxu1 %v2273_v1  ;;  %v1053_v19 = vmul.f32 0.7978846, %v1045_v63  ;;  %v1052_v26 = vmul.f32 0.7978846, %v1044_v5 }
 0x194   :  { %v1091_v28 = vpop.xlane.xlu0 %1090 }
 0x195   :  { %v2843_v30 = vmul.f32 0.005, %v1091_v28 }
 0x196   :  { %v1119_v31 = vpop.xlane.xlu1 %1118 }
 0x197   :  { %v1132_v32 = vmul.f32 0.005, %v1119_v31  ;;  %v1136_v33 = vmul.f32 %v2843_v30, %v2843_v30  ;;  %v1149_v37 = vsub.f32 %v2768_v51, %v2843_v30 }
 0x198   :  { %v1095_v36 = vpop.xlane.xlu0 %1094 }
 0x199   :  { %v1140_v38 = vsub.f32 %v1132_v32, %v1136_v33  ;;  %v2854_v39 = vmul.f32 0.005, %v1095_v36  ;;  %v1086_v32 = vld [vmem:[%s3175_s9] sm:$0x3]  ;;  %v1148_v36 = vsub.f32 %v2766_v49, %v2843_v30 }
 0x19a   :  { %v1123_v41 = vpop.xlane.xlu1 %1122  ;;  %v2899_v43 = vrot.slane %v1086_v32, %v2754_v8  ;;  %v1087_v49 = vld [vmem:[%s3176_s10] sm:$0x3] }
 0x19b   :  { %v1144_v44 = vmax.f32 %v1140_v38, 0.0  ;;  %v1133_v45 = vmul.f32 0.005, %v1123_v41  ;;  %v1137_v48 = vmul.f32 %v2854_v39, %v2854_v39  ;;  %v1150_v51 = vsub.f32 %v2772_v54, %v2854_v39 }
 0x19c   :  { %v791_v53 = vpop.f32.mrb[0].mxu0  ;;  %v1151_v30 = vsub.f32 %v2778_v57, %v2854_v39  ;;  %v2912_v50 = vrot.slane %v1087_v49, %v2754_v8 }
 0x19d   :  { %v1156_v52 = vadd.f32 1e-05, %v1144_v44  ;;  %v1141_v56 = vsub.f32 %v1133_v45, %v1137_v48  ;;  %v2861_v58 = vadd.f32 %v791_v53, %v184_v42  ;;  %v793_v59 = vpop.f32.mrb[1].mxu0  ;;  %v2909_v48 = vrot.slane %v1087_v49, %v2749_v6  ;;  %v2197_v49 = vld [vmem:[%s3173_s11 + $0x10] sm:$0xff]  }
 0x19e   :  { %v2864_v61 = vadd.f32 %v793_v59, %v188_v46  ;;  %v795_v62 = vpop.f32.mrb[2].mxu0 }
 0x19f   :  { %2237 = vrsqrt.f32 %v1156_v52  ;;  %v1145_v0 = vmax.f32 %v1141_v56, 0.0  ;;  %v800_v2 = vmul.f32 %v2861_v58, %v2861_v58  ;;  %v2869_v3 = vadd.f32 %v795_v62, %v184_v42  ;;  %v797_v4 = vpop.f32.mrb[3].mxu0 }
 0x1a0   :  { %v801_v7 = vmul.f32 %v2864_v61, %v2864_v61  ;;  %v2874_v11 = vadd.f32 %v797_v4, %v188_v46  ;;  %v2896_v42 = vrot.slane %v1086_v32, %v2749_v6  ;;  %v2196_v32 = vld [vmem:[%s3173_s11 + $0x8] sm:$0xff]  }
 0x1a1   :  { %v1157_v13 = vadd.f32 1e-05, %v1145_v0  ;;  %v804_v14 = vmul.f32 %v2861_v58, %v800_v2  ;;  %v802_v15 = vmul.f32 %v2869_v3, %v2869_v3 }
 0x1a2   :  { %v805_v17 = vmul.f32 %v2864_v61, %v801_v7  ;;  %v803_v18 = vmul.f32 %v2874_v11, %v2874_v11 }
 0x1a3   :  { %2239 = vrsqrt.f32 %v1157_v13  ;;  %v808_v20 = vmul.f32 0.044715, %v804_v14  ;;  %v806_v25 = vmul.f32 %v2869_v3, %v802_v15 }
 0x1a4   :  { %v809_v27 = vmul.f32 0.044715, %v805_v17  ;;  %v807_v28 = vmul.f32 %v2874_v11, %v803_v18  ;;  %2241 = vtanh.f32 %v1051_v12 }
 0x1a5   :  { %v812_v29 = vadd.f32 %v2861_v58, %v808_v20  ;;  %v810_v10 = vmul.f32 0.044715, %v806_v25  ;;  %2243 = vtanh.f32 %v1050_v16  ;;  %v2195_v16 = vld [vmem:[%s3173_s11] sm:$0xff]  }
 0x1a6   :  { %v813_v31 = vadd.f32 %v2864_v61, %v809_v27  ;;  %v811_v9 = vmul.f32 0.044715, %v807_v28  ;;  %2245 = vtanh.f32 %v1053_v19 }
 0x1a7   :  { %v816_v33 = vmul.f32 0.7978846, %v812_v29  ;;  %v814_v34 = vadd.f32 %v2869_v3, %v810_v10  ;;  %2247 = vtanh.f32 %v1052_v26 }
 0x1a8   :  { %v817_v38 = vmul.f32 0.7978846, %v813_v31  ;;  %v815_v40 = vadd.f32 %v2874_v11, %v811_v9 }
 0x1a9   :  { %v2238_v35 = vpop.eup %2237  ;;  %2249 = vtanh.f32 %v816_v33  ;;  %v818_v41 = vmul.f32 0.7978846, %v814_v34 }
 0x1aa   :  { %v1164_v44 = vmul.f32 %v2238_v35, %v1148_v36  ;;  %2251 = vtanh.f32 %v817_v38  ;;  %v819_v45 = vmul.f32 0.7978846, %v815_v40  ;;  %v1165_v46 = vmul.f32 %v2238_v35, %v1149_v37 }
 0x1ab   :  { %2253 = vtanh.f32 %v818_v41 }
 0x1ac   :  { %2255 = vtanh.f32 %v819_v45  ;;  %v1184_v56 = vmul.f32 %v2899_v43, %v1165_v46  ;;  %v1183_v59 = vmul.f32 %v2896_v42, %v1164_v44 }
 0x1ad   :  { %v2240_v47 = vpop.eup %2239 }
 0x1ae   :  { %v2242_v52 = vpop.eup %2241  ;;  %v1166_v53 = vmul.f32 %v2240_v47, %v1150_v51  ;;  %v1167_v55 = vmul.f32 %v2240_v47, %v1151_v30  ;;  %v1203_v63 = vadd.f32 %v2912_v50, %v1184_v56  ;;  %v1202_v2 = vadd.f32 %v2909_v48, %v1183_v59 }
 0x1af   :  { %v2244_v60 = vpop.eup %2243  ;;  %v1067_v7 = vadd.f32 1.0, %v2242_v52 }
 0x1b0   :  { %v2246_v54 = vpop.eup %2245  ;;  %v1186_v62 = vmul.f32 %v2899_v43, %v1167_v55  ;;  %v1185_v57 = vmul.f32 %v2896_v42, %v1166_v53  ;;  %v1066_v27 = vadd.f32 1.0, %v2244_v60 }
 0x1b1   :  { %v2248_v39 = vpop.eup %2247  ;;  %v1069_v19 = vadd.f32 1.0, %v2246_v54  ;;  %v1075_v10 = vmul.f32 0.5, %v1067_v7 }
 0x1b2   :  { %v1205_v0 = vadd.f32 %v2912_v50, %v1186_v62  ;;  %v1204_v4 = vadd.f32 %v2909_v48, %v1185_v57  ;;  %v1068_v9 = vadd.f32 1.0, %v2248_v39  ;;  %v1074_v37 = vmul.f32 0.5, %v1066_v27 }
 0x1b3   :  { %v2250_v5 = vpop.eup %2249  ;;  %v1077_v35 = vmul.f32 0.5, %v1069_v19  ;;  %v2207_v19 = vld [vmem:[%s3173_s11 + $0x60] ss:$0 sps:$4 sm:$0xff]  }
 0x1b4   :  { %v2252_v12 = vpop.eup %2251  ;;  %v1238_v13 = vpack.c.bf16 %v1205_v0, %v1203_v63  ;;  %v1237_v14 = vpack.c.bf16 %v1204_v4, %v1202_v2  ;;  %v824_v15 = vadd.f32 1.0, %v2250_v5  ;;  %v2966_v47 = vmul.f32 %v1074_v37, %v2827_v22  ;;  %v2198_v22 = vld [vmem:[%s3173_s11 + $0x18] sm:$0xff]   ;;  %v2199_v2 = vld [vmem:[%s3173_s11 + $0x20] sm:$0xff]  }
 0x1b5   :  { %v2254_v17 = vpop.eup %2253  ;;  %v825_v18 = vadd.f32 1.0, %v2252_v12  ;;  %v2959_v51 = vmul.f32 %v1077_v35, %v2830_v23  ;;  %v2200_v12 = vld [vmem:[%s3173_s11 + $0x28] sm:$0xff]  }
 0x1b6   :  { %v2256_v20 = vpop.eup %2255  ;;  %1945 = vmatprep.mubr.msk.bf16.mxu1 %vm838_vm1, %v1238_v13  ;;  %v828_v25 = vmul.f32 0.5, %v824_v15  ;;  %v826_v26 = vadd.f32 1.0, %v2254_v17  ;;  %v2201_v13 = vld [vmem:[%s3173_s11 + $0x30] sm:$0xff]   ;;  %v2203_v15 = vld [vmem:[%s3173_s11 + $0x40] sm:$0xff]  }
 0x1b7   :  { %1379 = vmatmul.mubr.bf16.vlgmr.msra.gmra.mrb[8].mxu1 %v1237_v14  ;;  %v829_v28 = vmul.f32 0.5, %v825_v18  ;;  %v827_v29 = vadd.f32 1.0, %v2256_v20  ;;  %v1100_v60 = vsel %vm838_vm1, %v2959_v51, 0.0  ;;  %v1115_v54 = vmul.f32 %v2959_v51, %v2959_v51  ;;  %v2202_v14 = vld [vmem:[%s3173_s11 + $0x38] sm:$0xff]   ;;  %v2205_v17 = vld [vmem:[%s3173_s11 + $0x50] sm:$0xff]  }
 0x1b8   :  { %v830_v31 = vmul.f32 0.5, %v826_v26  ;;  %1469 = vmatpush1.bf16.msra.mxu1 %v2195_v16  ;;  %v2934_v36 = vmul.f32 %v2861_v58, %v828_v25  ;;  %v1076_v58 = vmul.f32 0.5, %v1068_v9  ;;  %v2204_v16 = vld [vmem:[%s3173_s11 + $0x48] sm:$0xff]   ;;  %v2206_v18 = vld [vmem:[%s3173_s11 + $0x58] sm:$0xff]   ;;  %v1466_v20 = vsel %vm1342_vm2, %v2207_v19, 0 }
 0x1b9   :  { %v2930_v33 = vmul.f32 %v2864_v61, %v829_v28  ;;  %v831_v34 = vmul.f32 0.5, %v827_v29  ;;  %1470 = vmatprep.subr.bf16.mxu1 %v2273_v1  ;;  %v2944_v61 = vmul.f32 %v1075_v10, %v2824_v21  ;;  %v1128_v4 = vsel %vm838_vm1, %v1115_v54, 0.0 }
 0x1ba   :  { %v2948_v45 = vmul.f32 %v2869_v3, %v830_v31  ;;  %v850_v30 = vmul.f32 %v2934_v36, %v2934_v36  ;;  %v2976_v59 = vmul.f32 %v1076_v58, %v2833_v24  ;;  %v1112_v24 = vmul.f32 %v2966_v47, %v2966_v47 }
 0x1bb   :  { %v839_v38 = vsel %vm838_vm1, %v2930_v33, 0.0  ;;  %v2939_v40 = vmul.f32 %v2874_v11, %v831_v34  ;;  %v851_v41 = vmul.f32 %v2930_v33, %v2930_v33  ;;  %v1096_v53 = vsel %vm838_vm1, %v2944_v61, 0.0 }
 0x1bc   :  { %v840_v44 = vadd.f32 %v839_v38, %v2934_v36  ;;  %1471 = vmatpush1.bf16.msra.mxu1 %v2196_v32  ;;  %v1113_v23 = vmul.f32 %v2944_v61, %v2944_v61  ;;  %v852_v56 = vmul.f32 %v2948_v45, %v2948_v45  ;;  %v1097_v57 = vadd.f32 %v1096_v53, %v2966_v47 }
 0x1bd   :  { %v843_v11 = vsel %vm838_vm1, %v2939_v40, 0.0  ;;  %v854_v46 = vsel %vm838_vm1, %v851_v41, 0.0  ;;  %v853_v21 = vmul.f32 %v2939_v40, %v2939_v40  ;;  %1472 = vmatprep.subr.bf16.mxu1 %v2273_v1  ;;  %v1101_v63 = vadd.f32 %v1100_v60, %v2976_v59 }
 0x1be   :  { %841 = vadd.xlane.f32.xlu0 %v840_v44  ;;  %v844_v3 = vadd.f32 %v843_v11, %v2948_v45  ;;  %v855_v55 = vadd.f32 %v854_v46, %v850_v30  ;;  %v1124_v39 = vsel %vm838_vm1, %v1113_v23, 0.0  ;;  %v1114_v0 = vmul.f32 %v2976_v59, %v2976_v59 }
 0x1bf   :  { %v858_v52 = vsel %vm838_vm1, %v853_v21, 0.0  ;;  %v1125_v5 = vadd.f32 %v1124_v39, %v1112_v24 }
 0x1c0   :  { %845 = vadd.xlane.f32.xlu1 %v844_v3  ;;  %1473 = vmatpush1.bf16.msra.mxu1 %v2197_v49  ;;  %v859_v62 = vadd.f32 %v858_v52, %v852_v56  ;;  %v1129_v7 = vadd.f32 %v1128_v4, %v1114_v0  ;;  %v837_v0 = vld [vmem:[%s3179_s6] sm:$0x3] }
 0x1c1   :  { %1474 = vmatprep.subr.bf16.mxu1 %v2273_v1 }
 0x1c2   :  { %856 = vadd.xlane.f32.xlu0 %v855_v55 }
 0x1c4   :  { %860 = vadd.xlane.f32.xlu1 %v859_v62  ;;  %1475 = vmatpush1.bf16.msra.mxu1 %v2198_v22 }
 0x1c5   :  { %1476 = vmatprep.subr.bf16.mxu1 %v2273_v1 }
 0x1c6   :  { %1098 = vadd.xlane.f32.xlu0 %v1097_v57  ;;  %v836_v57 = vld [vmem:[%s3178_s5] sm:$0x3] }
 0x1c7   :  { %v886_v4 = vrot.slane %v836_v57, %v2749_v6 }
 0x1c8   :  { %1102 = vadd.xlane.f32.xlu1 %v1101_v63  ;;  %1477 = vmatpush1.bf16.msra.mxu1 %v2199_v2  ;;  %v890_v2 = vrot.slane %v836_v57, %v2754_v8  ;;  %v2219_v57 = vld [vmem:[%s3177_s13 + $0x58] sm:$0xff]  }
 0x1c9   :  { %1478 = vmatprep.subr.bf16.mxu1 %v2273_v1 }
 0x1ca   :  { %1126 = vadd.xlane.f32.xlu0 %v1125_v5 }
 0x1cc   :  { %1130 = vadd.xlane.f32.xlu1 %v1129_v7  ;;  %1479 = vmatpush1.bf16.msra.mxu1 %v2200_v12 }
 0x1cd   :  { %1480 = vmatprep.subr.bf16.mxu1 %v2273_v1 }
 0x1d0   :  { %1481 = vmatpush1.bf16.msra.mxu1 %v2201_v13 }
 0x1d1   :  { %1482 = vmatprep.subr.bf16.mxu1 %v2273_v1 }
 0x1d4   :  { %1483 = vmatpush1.bf16.msra.mxu1 %v2202_v14 }
 0x1d5   :  { %1484 = vmatprep.subr.bf16.mxu1 %v2273_v1 }
 0x1d8   :  { %1485 = vmatpush1.bf16.msra.mxu1 %v2203_v15 }
 0x1d9   :  { %1486 = vmatprep.subr.bf16.mxu1 %v2273_v1 }
 0x1dc   :  { %1487 = vmatpush1.bf16.msra.mxu1 %v2204_v16 }
 0x1dd   :  { %1488 = vmatprep.subr.bf16.mxu1 %v2273_v1 }
 0x1e0   :  { %1489 = vmatpush1.bf16.msra.mxu1 %v2205_v17 }
 0x1e1   :  { %1490 = vmatprep.subr.bf16.mxu1 %v2273_v1 }
 0x1e4   :  { %1491 = vmatpush1.bf16.msra.mxu1 %v2206_v18 }
 0x1e5   :  { %1492 = vmatprep.subr.bf16.mxu1 %v2273_v1 }
 0x1e8   :  { %1493 = vmatpush1.bf16.msra.mxu1 %v1466_v20 }
 0x1e9   :  { %1617 = vmatprep.subr.bf16.mxu1 %v2273_v1 }
 0x24b   :  { %v842_v25 = vpop.xlane.xlu0 %841 }
 0x24c   :  { %v848_v26 = vmul.f32 0.005, %v842_v25 }
 0x24d   :  { %v846_v27 = vpop.xlane.xlu1 %845 }
 0x24e   :  { %v849_v28 = vmul.f32 0.005, %v846_v27  ;;  %v864_v10 = vmul.f32 %v848_v26, %v848_v26  ;;  %v870_v39 = vsub.f32 %v2934_v36, %v848_v26  ;;  %v871_v63 = vsub.f32 %v2930_v33, %v848_v26 }
 0x24f   :  { %v857_v29 = vpop.xlane.xlu0 %856  ;;  %v905_v36 = vrot.slane %v837_v0, %v2754_v8  ;;  %v901_v33 = vrot.slane %v837_v0, %v2749_v6  ;;  %v2208_v6 = vld [vmem:[%s3177_s13] sm:$0xff]   ;;  %v2274_v0 = vmov 0.0  }
 0x250   :  { %v862_v31 = vmul.f32 0.005, %v857_v29  ;;  %v865_v34 = vmul.f32 %v849_v28, %v849_v28  ;;  %v872_v7 = vsub.f32 %v2948_v45, %v849_v28  ;;  %v873_v12 = vsub.f32 %v2939_v40, %v849_v28 }
 0x251   :  { %v861_v9 = vpop.xlane.xlu1 %860 }
 0x252   :  { %v866_v32 = vsub.f32 %v862_v31, %v864_v10  ;;  %v863_v35 = vmul.f32 0.005, %v861_v9 }
 0x253   :  { %v1099_v37 = vpop.xlane.xlu0 %1098 }
 0x254   :  { %v868_v38 = vmax.f32 %v866_v32, 0.0  ;;  %v867_v41 = vsub.f32 %v863_v35, %v865_v34  ;;  %v3032_v44 = vmul.f32 0.005, %v1099_v37  ;;  %v2209_v35 = vld [vmem:[%s3177_s13 + $0x8] sm:$0xff]  }
 0x255   :  { %v1103_v58 = vpop.xlane.xlu1 %1102 }
 0x256   :  { %v874_v49 = vadd.f32 1e-05, %v868_v38  ;;  %v869_v11 = vmax.f32 %v867_v41, 0.0  ;;  %v3034_v46 = vmul.f32 0.005, %v1103_v58  ;;  %v1138_v21 = vmul.f32 %v3032_v44, %v3032_v44  ;;  %v2210_v58 = vld [vmem:[%s3177_s13 + $0x10] sm:$0xff]  }
 0x257   :  { %v1127_v3 = vpop.xlane.xlu0 %1126  ;;  %v1153_v26 = vsub.f32 %v2944_v61, %v3032_v44 }
 0x258   :  { %2257 = vrsqrt.f32 %v874_v49  ;;  %v875_v30 = vadd.f32 1e-05, %v869_v11  ;;  %v1134_v52 = vmul.f32 0.005, %v1127_v3  ;;  %v1139_v53 = vmul.f32 %v3034_v46, %v3034_v46  ;;  %v2213_v49 = vld [vmem:[%s3177_s13 + $0x28] sm:$0xff]   ;;  %v2214_v11 = vld [vmem:[%s3177_s13 + $0x30] sm:$0xff]  }
 0x259   :  { %v1131_v23 = vpop.xlane.xlu1 %1130  ;;  %v1155_v10 = vsub.f32 %v2959_v51, %v3034_v46 }
 0x25a   :  { %2259 = vrsqrt.f32 %v875_v30  ;;  %v1142_v55 = vsub.f32 %v1134_v52, %v1138_v21  ;;  %v1135_v56 = vmul.f32 0.005, %v1131_v23  ;;  %v2215_v21 = vld [vmem:[%s3177_s13 + $0x38] sm:$0xff]   ;;  %v2216_v52 = vld [vmem:[%s3177_s13 + $0x40] sm:$0xff]  }
 0x25c   :  { %v1146_v22 = vmax.f32 %v1142_v55, 0.0  ;;  %v1143_v60 = vsub.f32 %v1135_v56, %v1139_v53  ;;  %v2217_v55 = vld [vmem:[%s3177_s13 + $0x48] sm:$0xff]   ;;  %v1154_v56 = vsub.f32 %v2976_v59, %v3034_v46  ;;  %v2220_v59 = vld [vmem:[%s3177_s13 + $0x60] ss:$0 sps:$4 sm:$0xff]  }
 0x25e   :  { %v1158_v54 = vadd.f32 1e-05, %v1146_v22  ;;  %v1147_v62 = vmax.f32 %v1143_v60, 0.0  ;;  %v2218_v22 = vld [vmem:[%s3177_s13 + $0x50] sm:$0xff]   ;;  %v1152_v60 = vsub.f32 %v2966_v47, %v3032_v44  ;;  %v1615_v47 = vsel %vm1342_vm2, %v2220_v59, 0 }
 0x260   :  { %2261 = vrsqrt.f32 %v1158_v54  ;;  %v1159_v24 = vadd.f32 1e-05, %v1147_v62 }
 0x262   :  { %v2258_v5 = vpop.eup %2257  ;;  %2263 = vrsqrt.f32 %v1159_v24 }
 0x263   :  { %v879_v13 = vmul.f32 %v2258_v5, %v871_v63  ;;  %v878_v14 = vmul.f32 %v2258_v5, %v870_v39  ;;  %v2226_v5 = vld [vmem:[%s3180_s15 + $0x28] sm:$0xff]  }
 0x264   :  { %v2260_v15 = vpop.eup %2259 }
 0x265   :  { %v881_v16 = vmul.f32 %v2260_v15, %v873_v12  ;;  %v894_v17 = vmul.f32 %v890_v2, %v879_v13  ;;  %v880_v18 = vmul.f32 %v2260_v15, %v872_v7  ;;  %v893_v19 = vmul.f32 %v886_v4, %v878_v14  ;;  %v2227_v7 = vld [vmem:[%s3180_s15 + $0x30] sm:$0xff]   ;;  %v2228_v12 = vld [vmem:[%s3180_s15 + $0x38] sm:$0xff]  }
 0x267   :  { %v896_v20 = vmul.f32 %v890_v2, %v881_v16  ;;  %v895_v25 = vmul.f32 %v886_v4, %v880_v18  ;;  %v909_v27 = vadd.f32 %v905_v36, %v894_v17  ;;  %v908_v29 = vadd.f32 %v901_v33, %v893_v19  ;;  %v2221_v2 = vld [vmem:[%s3180_s15] sm:$0xff]  }
 0x268   :  { %v2225_v4 = vld [vmem:[%s3180_s15 + $0x20] sm:$0xff]  }
 0x269   :  { %v911_v45 = vadd.f32 %v905_v36, %v896_v20  ;;  %v910_v40 = vadd.f32 %v901_v33, %v895_v25  ;;  %v1974_v18 = vld [vmem:[%s3181_s14] ss:$0 sm:$0xff] }
 0x26a   :  { %v2262_v28 = vpop.eup %2261 }
 0x26b   :  { %v1211_v8 = vpack.c.bf16 %v911_v45, %v909_v27  ;;  %v1210_v31 = vpack.c.bf16 %v910_v40, %v908_v29  ;;  %v1169_v9 = vmul.f32 %v2262_v28, %v1153_v26  ;;  %v1168_v62 = vmul.f32 %v2262_v28, %v1152_v60 }
 0x26c   :  { %v2264_v32 = vpop.eup %2263 }
 0x26d   :  { %1959 = vmatprep.mubr.msk.bf16.mxu1 %vm838_vm1, %v1211_v8  ;;  %v1171_v34 = vmul.f32 %v2264_v32, %v1155_v10  ;;  %v1188_v61 = vmul.f32 %v2899_v43, %v1169_v9  ;;  %v1170_v54 = vmul.f32 %v2264_v32, %v1154_v56  ;;  %v1187_v24 = vmul.f32 %v2896_v42, %v1168_v62 }
 0x26e   :  { %1501 = vmatmul.mubr.bf16.vlgmr.msra.gmra.mrb[12].mxu1 %v1210_v31  ;;  %v24_v8 = vstv %s3182_s18  ;;  %v1975_v31 = vld [vmem:[%s3183_s16] ss:$0 sm:$0xff] }
 0x26f   :  { %1618 = vmatpush1.bf16.msra.mxu1 %v2208_v6  ;;  %v1190_v51 = vmul.f32 %v2899_v43, %v1171_v34  ;;  %v1207_v37 = vadd.f32 %v2912_v50, %v1188_v61  ;;  %v2211_v43 = vld [vmem:[%s3177_s13 + $0x18] sm:$0xff]   ;;  %v1189_v46 = vmul.f32 %v2896_v42, %v1170_v54  ;;  %v1206_v39 = vadd.f32 %v2909_v48, %v1187_v24  ;;  %v2223_v42 = vld [vmem:[%s3180_s15 + $0x10] sm:$0xff]   ;;  %v1984_v61 = vld [vmem:[%s3184_s17] ss:$0 sm:$0xff] }
 0x270   :  { %1619 = vmatprep.subr.bf16.mxu1 %v2273_v1  ;;  %25 = vst [vmem:[#allocation2] sm:$0x1] %v24_v8 }
 0x271   :  { %v1209_v38 = vadd.f32 %v2912_v50, %v1190_v51  ;;  %v2212_v50 = vld [vmem:[%s3177_s13 + $0x20] sm:$0xff]   ;;  %v1208_v44 = vadd.f32 %v2909_v48, %v1189_v46  ;;  %v2224_v48 = vld [vmem:[%s3180_s15 + $0x18] sm:$0xff]  }
 0x273   :  { %1620 = vmatpush1.bf16.msra.mxu1 %v2209_v35  ;;  %v1510_v41 = vpack.c.bf16 %v1209_v38, %v1207_v37  ;;  %v1509_v63 = vpack.c.bf16 %v1208_v44, %v1206_v39 }
 0x274   :  { %1621 = vmatprep.subr.bf16.mxu1 %v2273_v1 }
 0x275   :  { %1973 = vmatprep.mubr.msk.bf16.mxu1 %vm838_vm1, %v1510_v41 }
 0x277   :  { %1622 = vmatpush1.bf16.msra.mxu1 %v2210_v58 }
 0x278   :  { %1623 = vmatprep.subr.bf16.mxu1 %v2273_v1 }
 0x27b   :  { %1624 = vmatpush1.bf16.msra.mxu1 %v2211_v43 }
 0x27c   :  { %1625 = vmatprep.subr.bf16.mxu1 %v2273_v1 }
 0x27f   :  { %1626 = vmatpush1.bf16.msra.mxu1 %v2212_v50 }
 0x280   :  { %1627 = vmatprep.subr.bf16.mxu1 %v2273_v1 }
 0x283   :  { %1628 = vmatpush1.bf16.msra.mxu1 %v2213_v49  ;;  %v1985_v49 = vld [vmem:[#allocation2] ss:$0 sm:$0xff] }
 0x284   :  { %1629 = vmatprep.subr.bf16.mxu1 %v2273_v1 }
 0x287   :  { %1630 = vmatpush1.bf16.msra.mxu1 %v2214_v11 }
 0x288   :  { %1631 = vmatprep.subr.bf16.mxu1 %v2273_v1 }
 0x28a   :  { %v1380_v3 = vpop.f32.mrb[8].mxu1 }
 0x28b   :  { %v1382_v30 = vpop.f32.mrb[9].mxu1  ;;  %1632 = vmatpush1.bf16.msra.mxu1 %v2215_v21 }
 0x28c   :  { %v1383_v53 = vpop.f32.mrb[10].mxu1  ;;  %1633 = vmatprep.subr.bf16.mxu1 %v2273_v1 }
 0x28d   :  { %v1385_v23 = vpop.f32.mrb[11].mxu1 }
 0x28f   :  { %1634 = vmatpush1.bf16.msra.mxu1 %v2216_v52 }
 0x290   :  { %1635 = vmatprep.subr.bf16.mxu1 %v2273_v1 }
 0x293   :  { %1636 = vmatpush1.bf16.msra.mxu1 %v2217_v55 }
 0x294   :  { %1637 = vmatprep.subr.bf16.mxu1 %v2273_v1 }
 0x297   :  { %1638 = vmatpush1.bf16.msra.mxu1 %v2218_v22 }
 0x298   :  { %1639 = vmatprep.subr.bf16.mxu1 %v2273_v1 }
 0x29b   :  { %1640 = vmatpush1.bf16.msra.mxu1 %v2219_v57 }
 0x29c   :  { %1641 = vmatprep.subr.bf16.mxu1 %v2273_v1  ;;  %v2222_v1 = vld [vmem:[%s3180_s15 + $0x8] sm:$0xff]  }
 0x29f   :  { %1642 = vmatpush1.bf16.msra.mxu1 %v1615_v47 }
 0x2a0   :  { %1997 = vmatprep.subr.bf16.mxu1 %v2274_v0 }
 0x2a2   :  { %1650 = vmatmul.mubr.bf16.vlgmr.msra.gmra.mrb[16].mxu1 %v1509_v63 }
 0x2a3   :  { %1998 = vmatpush3.bf16.msra.mxu1 %v2221_v2  ;;  %2013 = vmatprep.mubr.msk.bf16.mxu1 %vm2275_vm3, %v2274_v0 }
 0x2a4   :  { %1999 = vmatprep.subr.bf16.mxu1 %v2274_v0 }
 0x2a7   :  { %2000 = vmatpush3.bf16.msra.mxu1 %v2222_v1 }
 0x2a8   :  { %2001 = vmatprep.subr.bf16.mxu1 %v2274_v0 }
 0x2ab   :  { %2002 = vmatpush3.bf16.msra.mxu1 %v2223_v42 }
 0x2ac   :  { %2003 = vmatprep.subr.bf16.mxu1 %v2274_v0 }
 0x2af   :  { %2004 = vmatpush3.bf16.msra.mxu1 %v2224_v48 }
 0x2b0   :  { %2005 = vmatprep.subr.bf16.mxu1 %v2274_v0 }
 0x2b3   :  { %2006 = vmatpush3.bf16.msra.mxu1 %v2225_v4 }
 0x2b4   :  { %2007 = vmatprep.subr.bf16.mxu1 %v2274_v0 }
 0x2b7   :  { %2008 = vmatpush3.bf16.msra.mxu1 %v2226_v5 }
 0x2b8   :  { %2009 = vmatprep.subr.bf16.mxu1 %v2274_v0 }
 0x2bb   :  { %2010 = vmatpush3.bf16.msra.mxu1 %v2227_v7 }
 0x2bc   :  { %2011 = vmatprep.subr.bf16.mxu1 %v2274_v0 }
 0x2bf   :  { %2012 = vmatpush3.bf16.msra.mxu1 %v2228_v12 }
 0x341   :  { %v1502_v13 = vpop.f32.mrb[12].mxu1 }
 0x342   :  { %v1503_v14 = vadd.f32 %v1502_v13, %v1380_v3  ;;  %v1504_v15 = vpop.f32.mrb[13].mxu1 }
 0x343   :  { %v1505_v36 = vpop.f32.mrb[14].mxu1 }
 0x344   :  { %v1506_v33 = vadd.f32 %v1505_v36, %v1383_v53  ;;  %v1507_v16 = vpop.f32.mrb[15].mxu1 }
 0x375   :  { %v1651_v17 = vpop.f32.mrb[16].mxu1 }
 0x376   :  { %v1658_v19 = vadd.f32 %v1651_v17, %v1503_v14  ;;  %v1653_v20 = vpop.f32.mrb[17].mxu1 }
 0x377   :  { %v1654_v25 = vpop.f32.mrb[18].mxu1 }
 0x378   :  { %v1667_v26 = vadd.f32 %v1974_v18, %v1658_v19  ;;  %v1659_v27 = vadd.f32 %v1654_v25, %v1506_v33  ;;  %v1656_v45 = vpop.f32.mrb[19].mxu1 }
 0x37a   :  { %v1668_v29 = vadd.f32 %v1974_v18, %v1659_v27  ;;  %v1669_v40 = vmax.f32 %v1667_v26, 0.0 }
 0x37c   :  { %v1670_v28 = vmax.f32 %v1668_v29, 0.0 }
 0x37e   :  { %v1671_v10 = vpack.c.bf16 %v1670_v28, %v1669_v40 }
 0x380   :  { %2014 = vmatmul.mubr.bf16.vlgmr.msra.gmra.mrb[20].mxu1 %v1671_v10 }
 0x453   :  { %v1777_v6 = vpop.f32.mrb[20].mxu1 }
 0x454   :  { %v1778_v9 = vadd.f32 %v1975_v31, %v1777_v6  ;;  %v2015_v32 = vpop.f32.mrb[21].mxu1 }
 0x455   :  { %v1780_v34 = vpop.f32.mrb[22].mxu1 }
 0x456   :  { %v1784_v35 = vmax.f32 %v1778_v9, 0.0  ;;  %v1781_v51 = vadd.f32 %v1975_v31, %v1780_v34  ;;  %v2016_v37 = vpop.f32.mrb[23].mxu1 }
 0x458   :  { %v1785_v38 = vmax.f32 %v1781_v51, 0.0  ;;  %v1793_v41 = vmul.f32 %v1984_v61, %v1784_v35 }
 0x45a   :  { %v1796_v58 = vsel %vm1795_vm4, %v1793_v41, 0.0  ;;  %v1794_v43 = vmul.f32 %v1984_v61, %v1785_v38 }
 0x45b   :  { %1797 = vadd.xlane.f32.xlu0 %v1796_v58 }
 0x45c   :  { %v1799_v50 = vsel %vm1795_vm4, %v1794_v43, 0.0 }
 0x45d   :  { %1800 = vadd.xlane.f32.xlu1 %v1799_v50 }
 0x4e8   :  { %v1798_v11 = vpop.xlane.xlu0 %1797 }
 0x4e9   :  { %v1809_v21 = vadd.f32 %v1985_v49, %v1798_v11 }
 0x4ea   :  { %v1801_v3 = vpop.xlane.xlu1 %1800 }
 0x4eb   :  { %v1986_v30 = vmul.f32 -1.442695, %v1809_v21  ;;  %v1810_v52 = vadd.f32 %v1985_v49, %v1801_v3 }
 0x4ed   :  { %2265 = vpow2.f32 %v1986_v30  ;;  %v1987_v53 = vmul.f32 -1.442695, %v1810_v52 }
 0x4ef   :  { %2267 = vpow2.f32 %v1987_v53 }
 0x4f7   :  { %v2266_v23 = vpop.eup %2265 }
 0x4f8   :  { %v1817_v55 = vadd.f32 1.0, %v2266_v23 }
 0x4f9   :  { %v2268_v56 = vpop.eup %2267 }
 0x4fa   :  { %2269 = vrcp.f32 %v1817_v55  ;;  %v1818_v22 = vadd.f32 1.0, %v2268_v56 }
 0x4fc   :  { %2271 = vrcp.f32 %v1818_v22 }
 0x504   :  { %v2270_v60 = vpop.eup %2269 }
 0x505   :  { %1824 = vst.msk [vmem:[%s3185_s19] sm:$0xff] %vm1823_vm5, %v2270_v60 }
 0x506   :  { %v2272_v54 = vpop.eup %2271 }
 0x507   :  { %1825 = vst.msk [vmem:[%s3185_s19 + $0x8] sm:$0xff] %vm1823_vm5, %v2272_v54 }

</bundles_post_ra>
